<compile_context>
chip_gen: v5e
topology: v5e:2x2
jax: 0.10.0
libtpu: 0.0.40
codegen_flags: <defaults>
</compile_context>

<pallas_src>
import functools

import jax
import jax.numpy as jnp
from jax import lax
from jax.experimental import pallas as pl
from jax.experimental.pallas import tpu as pltpu


def _round_up(x, m):
    return (x + m - 1) // m * m


def _bigram_kernel(idx_sref,            # scalar-prefetch: (BT_pad,) int32 in SMEM
                   tgt_ref,             # (tm, 1) int32
                   emb_ref,             # (V, E) f32, resident in VMEM
                   w_ref,               # (E, tn) compute dtype
                   b_ref,               # (1, tn) f32
                   logits_ref,          # (tm, tn) f32 out
                   nll_ref,             # (tm, 1) f32 out (per-token NLL)
                   tok_emb,             # (tm, E) f32 scratch (gathered rows)
                   m_sc, l_sc, p_sc):   # (tm, 1) f32 scratch
    i = pl.program_id(0)
    j = pl.program_id(1)
    nj = pl.num_programs(1)
    tm = tok_emb.shape[0]
    tn = w_ref.shape[1]

    @pl.when(j == 0)
    def _():
        # Row gather: tok_emb[t] = emb[idx[i*tm + t]]  (dynamic slices, no one-hot).
        base = i * tm

        def gather_row(t, carry):
            row = idx_sref[base + t]
            tok_emb[pl.ds(t, 1), :] = emb_ref[pl.ds(row, 1), :]
            return carry

        lax.fori_loop(0, tm, gather_row, 0)
        m_sc[...] = jnp.full_like(m_sc, -jnp.inf)
        l_sc[...] = jnp.zeros_like(l_sc)
        p_sc[...] = jnp.zeros_like(p_sc)

    # lm_head tile: (tm, E) @ (E, tn) on the MXU with f32 accumulation.
    logits = jnp.dot(tok_emb[...].astype(w_ref.dtype), w_ref[...],
                     preferred_element_type=jnp.float32) + b_ref[...]
    logits_ref[...] = logits

    # Online cross-entropy across vocab tiles.
    tgt = tgt_ref[...]                                               # (tm, 1)
    col = j * tn + lax.broadcasted_iota(jnp.int32, (tm, tn), 1)      # global cols
    m_new = jnp.maximum(m_sc[...], jnp.max(logits, axis=-1, keepdims=True))
    l_sc[...] = (l_sc[...] * jnp.exp(m_sc[...] - m_new)
                 + jnp.sum(jnp.exp(logits - m_new), axis=-1, keepdims=True))
    p_sc[...] = p_sc[...] + jnp.sum(
        jnp.where(col == tgt, logits, 0.0), axis=-1, keepdims=True)
    m_sc[...] = m_new

    @pl.when(j == nj - 1)
    def _():
        # NLL = logsumexp(logits) - logits[target]
        nll_ref[...] = m_sc[...] + jnp.log(l_sc[...]) - p_sc[...]


@functools.partial(jax.jit, static_argnames=("tm", "tn_max", "use_bf16"))
def _bigram_fwd(idx, targets, emb_table, w, b, *, tm=128, tn_max=512,
                use_bf16=True):
    B, T = idx.shape
    V, E = emb_table.shape
    BT = B * T
    BT_pad = _round_up(BT, tm)
    tn = min(tn_max, _round_up(V, 128))       # lane-dense vocab tile
    V_pad = _round_up(V, tn)
    compute_dtype = jnp.bfloat16 if use_bf16 else jnp.float32

    idx_flat = jnp.pad(idx.reshape(BT).astype(jnp.int32), (0, BT_pad - BT))
    tgt2d = jnp.pad(targets.reshape(BT, 1).astype(jnp.int32),
                    ((0, BT_pad - BT), (0, 0)))
    emb_f32 = emb_table.astype(jnp.float32)
    w_pad = jnp.pad(w.astype(compute_dtype), ((0, 0), (0, V_pad - V)))
    # Padded vocab columns get a very negative bias so they never win the max
    # nor contribute to sum-exp; they are sliced off in the wrapper.
    b_pad = jnp.pad(b.astype(jnp.float32), (0, V_pad - V),
                    constant_values=-1e30).reshape(1, V_pad)

    grid = (BT_pad // tm, V_pad // tn)

    logits_pad, nll_pad = pl.pallas_call(
        _bigram_kernel,
        out_shape=(
            jax.ShapeDtypeStruct((BT_pad, V_pad), jnp.float32),
            jax.ShapeDtypeStruct((BT_pad, 1), jnp.float32),
        ),
        grid_spec=pltpu.PrefetchScalarGridSpec(
            num_scalar_prefetch=1,
            grid=grid,
            in_specs=[
                pl.BlockSpec((tm, 1), lambda i, j, idx: (i, 0)),   # targets
                pl.BlockSpec((V, E), lambda i, j, idx: (0, 0)),    # embedding (resident)
                pl.BlockSpec((E, tn), lambda i, j, idx: (0, j)),   # lm_head W tile
                pl.BlockSpec((1, tn), lambda i, j, idx: (0, j)),   # lm_head bias tile
            ],
            out_specs=[
                pl.BlockSpec((tm, tn), lambda i, j, idx: (i, j)),  # logits tile
                pl.BlockSpec((tm, 1), lambda i, j, idx: (i, 0)),   # per-token NLL
            ],
            scratch_shapes=[
                pltpu.VMEM((tm, E), jnp.float32),   # gathered token embeddings
                pltpu.VMEM((tm, 1), jnp.float32),   # running max
                pltpu.VMEM((tm, 1), jnp.float32),   # running sum-exp
                pltpu.VMEM((tm, 1), jnp.float32),   # picked target logit
            ],
        ),
        compiler_params=pltpu.CompilerParams(
            # Token tiles shard across TensorCores on v7x; vocab axis is the
            # online-CE reduction. Explicit VMEM budget fits all of v5e/v6e/v7x.
            dimension_semantics=("parallel", "arbitrary"),
            vmem_limit_bytes=32 * 1024 * 1024,
        ),
    )(idx_flat, tgt2d, emb_f32, w_pad, b_pad)

    logits = logits_pad[:BT, :V].reshape(B, T, V)
    loss = jnp.sum(nll_pad[:BT, 0]) / BT       # F.cross_entropy(reduction='mean')
    return logits, loss


def bigram_forward(idx, targets, emb_table, w, b, **kw):
    """Matches SimpleBigram.forward: returns (logits (B,T,V), loss or None)."""
    if targets is None:
        logits, _ = _bigram_fwd(idx, jnp.zeros_like(idx), emb_table, w, b, **kw)
        return logits, None
    return _bigram_fwd(idx, targets, emb_table, w, b, **kw)


def _reference(idx, targets, emb_table, w, b):
    """Pure-JAX reference of SimpleBigram.forward."""
    tok_emb = emb_table[idx]                    # (B, T, E)
    logits = tok_emb @ w + b                    # (B, T, V)
    B, T, V = logits.shape
    pred = logits.reshape(B * T, V)
    gt = targets.reshape(B * T)
    logp = jax.nn.log_softmax(pred, axis=-1)
    loss = -jnp.mean(logp[jnp.arange(B * T), gt])
    return logits, loss


if __name__ == "__main__":
    # Small config: vocab=64, block_size=T=8, n_embed=32, batch=2
    vocab_size, block_size, n_embed = 64, 8, 32
    B, T = 2, block_size

    key = jax.random.PRNGKey(0)
    k_emb, k_w, k_b, k_idx, k_tgt = jax.random.split(key, 5)

    # Deterministic parameter init (mimics nn.Embedding ~N(0,1),
    # nn.Linear ~U(-1/sqrt(fan_in), 1/sqrt(fan_in))).
    emb_table = jax.random.normal(k_emb, (vocab_size, n_embed), dtype=jnp.float32)
    bound = 1.0 / (n_embed ** 0.5)
    w = jax.random.uniform(k_w, (n_embed, vocab_size), jnp.float32, -bound, bound)
    b = jax.random.uniform(k_b, (vocab_size,), jnp.float32, -bound, bound)

    idx = jax.random.randint(k_idx, (B, T), 0, vocab_size, dtype=jnp.int32)
    targets = jax.random.randint(k_tgt, (B, T), 0, vocab_size, dtype=jnp.int32)

    ref_logits, ref_loss = _reference(idx, targets, emb_table, w, b)

    # Strict check with f32 MXU operands (bit-for-bit comparable to f32 reference).
    logits, loss = bigram_forward(idx, targets, emb_table, w, b, use_bf16=False)
    jax.block_until_ready((logits, loss))
    assert logits.shape == (B, T, vocab_size)
    assert jnp.allclose(logits, ref_logits, atol=1e-4, rtol=1e-4)
    assert jnp.allclose(loss, ref_loss, atol=1e-4, rtol=1e-4)

    # Fast path: bf16 MXU operands, f32 accumulation (looser tolerance because
    # operands are rounded to bf16; accumulation stays f32).
    logits_bf16, loss_bf16 = bigram_forward(idx, targets, emb_table, w, b,
                                            use_bf16=True)
    jax.block_until_ready((logits_bf16, loss_bf16))
    assert jnp.allclose(logits_bf16, ref_logits, atol=2e-2, rtol=2e-2)
    assert jnp.allclose(loss_bf16, ref_loss, atol=2e-2, rtol=2e-2)

    print("KERNEL_OK")
</pallas_src>

<mosaic_0001>
module attributes {stable_mosaic.version = 11 : i64} {
  func.func @_bigram_kernel(%arg0: i32, %arg1: i32, %arg2: memref<128xi32, #tpu.memory_space<smem>>, %arg3: memref<128x1xi32, #tpu.memory_space<vmem>>, %arg4: memref<64x32xf32, #tpu.memory_space<vmem>>, %arg5: memref<32x128xf32, #tpu.memory_space<vmem>>, %arg6: memref<1x128xf32, #tpu.memory_space<vmem>>, %arg7: memref<128x128xf32, #tpu.memory_space<vmem>>, %arg8: memref<128x1xf32, #tpu.memory_space<vmem>>, %arg9: memref<128x32xf32, #tpu.memory_space<vmem>>, %arg10: memref<128x1xf32, #tpu.memory_space<vmem>>, %arg11: memref<128x1xf32, #tpu.memory_space<vmem>>, %arg12: memref<128x1xf32, #tpu.memory_space<vmem>>) attributes {dimension_semantics = [#tpu.dimension_semantics<parallel>, #tpu.dimension_semantics<arbitrary>], iteration_bounds = array<i64: 1, 1>, scalar_prefetch = 1 : i64, scratch_operands = 4 : i64, tpu.core_type = #tpu.core_type<tc>, window_params = [{transform_indices = @transform_0, window_bounds = array<i64: 128, 1>}, {pipeline_mode = #tpu.pipeline_mode<synchronous>, transform_indices = @transform_1, window_bounds = array<i64: 64, 32>}, {transform_indices = @transform_2, window_bounds = array<i64: 32, 128>}, {transform_indices = @transform_3, window_bounds = array<i64: 1, 128>}, {transform_indices = @transform_4, window_bounds = array<i64: 128, 128>}, {transform_indices = @transform_5, window_bounds = array<i64: 128, 1>}]} {
    %c0_i32 = arith.constant 0 : i32
    %0 = arith.cmpi eq, %arg1, %c0_i32 : i32
    %1 = arith.extui %0 : i1 to i32
    %c0_i32_0 = arith.constant 0 : i32
    %2 = arith.cmpi ne, %1, %c0_i32_0 : i32
    scf.if %2 {
      %c128_i32_30 = arith.constant 128 : i32
      %44 = arith.muli %arg0, %c128_i32_30 : i32
      %c0_i32_31 = arith.constant 0 : i32
      %c128_i32_32 = arith.constant 128 : i32
      %45 = arith.addi %c0_i32_31, %c128_i32_32 : i32
      %c1_i32 = arith.constant 1 : i32
      scf.for %arg13 = %c0_i32_31 to %45 step %c1_i32  : i32 {
        %52 = arith.addi %44, %arg13 : i32
        %53 = arith.index_cast %52 : i32 to index
        %54 = memref.load %arg2[%53] : memref<128xi32, #tpu.memory_space<smem>>
        %55 = arith.index_cast %54 : i32 to index
        %c0_43 = arith.constant 0 : index
        %56 = vector.load %arg4[%55, %c0_43] : memref<64x32xf32, #tpu.memory_space<vmem>>, vector<1x32xf32>
        %57 = arith.index_cast %arg13 : i32 to index
        %c0_44 = arith.constant 0 : index
        %58 = vector.load %arg9[%57, %c0_44] : memref<128x32xf32, #tpu.memory_space<vmem>>, vector<1x32xf32>
        tpu.vector_store %arg9[%57, %c0_44], %56 {strides = array<i32>} : memref<128x32xf32, #tpu.memory_space<vmem>>, vector<1x32xf32>,
      }
      %c128_i32_33 = arith.constant 128 : i32
      %cst_34 = arith.constant 0xFF800000 : f32
      %46 = vector.broadcast %cst_34 : f32 to vector<128x1xf32>
      %c0_35 = arith.constant 0 : index
      %c0_36 = arith.constant 0 : index
      %47 = vector.load %arg10[%c0_35, %c0_36] : memref<128x1xf32, #tpu.memory_space<vmem>>, vector<128x1xf32>
      tpu.vector_store %arg10[%c0_35, %c0_36], %46 {strides = array<i32>} : memref<128x1xf32, #tpu.memory_space<vmem>>, vector<128x1xf32>,
      %cst_37 = arith.constant 0.000000e+00 : f32
      %48 = vector.broadcast %cst_37 : f32 to vector<128x1xf32>
      %c0_38 = arith.constant 0 : index
      %c0_39 = arith.constant 0 : index
      %49 = vector.load %arg11[%c0_38, %c0_39] : memref<128x1xf32, #tpu.memory_space<vmem>>, vector<128x1xf32>
      tpu.vector_store %arg11[%c0_38, %c0_39], %48 {strides = array<i32>} : memref<128x1xf32, #tpu.memory_space<vmem>>, vector<128x1xf32>,
      %cst_40 = arith.constant 0.000000e+00 : f32
      %50 = vector.broadcast %cst_40 : f32 to vector<128x1xf32>
      %c0_41 = arith.constant 0 : index
      %c0_42 = arith.constant 0 : index
      %51 = vector.load %arg12[%c0_41, %c0_42] : memref<128x1xf32, #tpu.memory_space<vmem>>, vector<128x1xf32>
      tpu.vector_store %arg12[%c0_41, %c0_42], %50 {strides = array<i32>} : memref<128x1xf32, #tpu.memory_space<vmem>>, vector<128x1xf32>,
    } else {
    }
    %c0 = arith.constant 0 : index
    %c0_1 = arith.constant 0 : index
    %3 = vector.load %arg9[%c0, %c0_1] : memref<128x32xf32, #tpu.memory_space<vmem>>, vector<128x32xf32>
    %c0_2 = arith.constant 0 : index
    %c0_3 = arith.constant 0 : index
    %4 = vector.load %arg5[%c0_2, %c0_3] : memref<32x128xf32, #tpu.memory_space<vmem>>, vector<32x128xf32>
    %cst = arith.constant dense<0.000000e+00> : vector<128x128xf32>
    %5 = tpu.matmul %3, %4, %cst {dimension_numbers = #tpu.dot_dimension_numbers<[1], [0], [0], [1], [0, 0, 1, 1], [], []>} : vector<128x32xf32>, vector<32x128xf32>, vector<128x128xf32> -> vector<128x128xf32>
    %c0_4 = arith.constant 0 : index
    %c0_5 = arith.constant 0 : index
    %6 = vector.load %arg6[%c0_4, %c0_5] : memref<1x128xf32, #tpu.memory_space<vmem>>, vector<1x128xf32>
    %7 = vector.broadcast %6 : vector<1x128xf32> to vector<128x128xf32>
    %8 = arith.addf %5, %7 : vector<128x128xf32>
    %c0_6 = arith.constant 0 : index
    %c0_7 = arith.constant 0 : index
    %9 = vector.load %arg7[%c0_6, %c0_7] : memref<128x128xf32, #tpu.memory_space<vmem>>, vector<128x128xf32>
    tpu.vector_store %arg7[%c0_6, %c0_7], %8 {strides = array<i32>} : memref<128x128xf32, #tpu.memory_space<vmem>>, vector<128x128xf32>,
    %c0_8 = arith.constant 0 : index
    %c0_9 = arith.constant 0 : index
    %10 = vector.load %arg3[%c0_8, %c0_9] : memref<128x1xi32, #tpu.memory_space<vmem>>, vector<128x1xi32>
    %c128_i32 = arith.constant 128 : i32
    %11 = arith.muli %arg1, %c128_i32 : i32
    %12 = tpu.iota {dimensions = array<i32: 1>} : vector<128x128xi32>
    %13 = vector.broadcast %11 : i32 to vector<128x128xi32>
    %14 = arith.addi %13, %12 : vector<128x128xi32>
    %c0_10 = arith.constant 0 : index
    %c0_11 = arith.constant 0 : index
    %15 = vector.load %arg10[%c0_10, %c0_11] : memref<128x1xf32, #tpu.memory_space<vmem>>, vector<128x1xf32>
    %cst_12 = arith.constant dense<0xFF800000> : vector<128xf32>
    %16 = vector.multi_reduction <maximumf>, %8, %cst_12 [1] : vector<128x128xf32> to vector<128xf32>
    %17 = vector.shape_cast %16 : vector<128xf32> to vector<128x1xf32>
    %18 = arith.maximumf %15, %17 : vector<128x1xf32>
    %c0_13 = arith.constant 0 : index
    %c0_14 = arith.constant 0 : index
    %19 = vector.load %arg11[%c0_13, %c0_14] : memref<128x1xf32, #tpu.memory_space<vmem>>, vector<128x1xf32>
    %c0_15 = arith.constant 0 : index
    %c0_16 = arith.constant 0 : index
    %20 = vector.load %arg10[%c0_15, %c0_16] : memref<128x1xf32, #tpu.memory_space<vmem>>, vector<128x1xf32>
    %21 = arith.subf %20, %18 : vector<128x1xf32>
    %22 = math.exp %21 : vector<128x1xf32>
    %23 = arith.mulf %19, %22 : vector<128x1xf32>
    %24 = vector.broadcast %18 : vector<128x1xf32> to vector<128x128xf32>
    %25 = arith.subf %8, %24 : vector<128x128xf32>
    %26 = math.exp %25 : vector<128x128xf32>
    %cst_17 = arith.constant dense<0.000000e+00> : vector<128xf32>
    %27 = vector.multi_reduction <add>, %26, %cst_17 [1] : vector<128x128xf32> to vector<128xf32>
    %28 = vector.shape_cast %27 : vector<128xf32> to vector<128x1xf32>
    %29 = arith.addf %23, %28 : vector<128x1xf32>
    %c0_18 = arith.constant 0 : index
    %c0_19 = arith.constant 0 : index
    %30 = vector.load %arg11[%c0_18, %c0_19] : memref<128x1xf32, #tpu.memory_space<vmem>>, vector<128x1xf32>
    tpu.vector_store %arg11[%c0_18, %c0_19], %29 {strides = array<i32>} : memref<128x1xf32, #tpu.memory_space<vmem>>, vector<128x1xf32>,
    %c0_20 = arith.constant 0 : index
    %c0_21 = arith.constant 0 : index
    %31 = vector.load %arg12[%c0_20, %c0_21] : memref<128x1xf32, #tpu.memory_space<vmem>>, vector<128x1xf32>
    %32 = vector.broadcast %10 : vector<128x1xi32> to vector<128x128xi32>
    %33 = arith.cmpi eq, %14, %32 : vector<128x128xi32>
    %cst_22 = arith.constant 0.000000e+00 : f32
    %34 = vector.broadcast %cst_22 : f32 to vector<128x128xf32>
    %35 = arith.select %33, %8, %34 : vector<128x128xi1>, vector<128x128xf32>
    %cst_23 = arith.constant dense<0.000000e+00> : vector<128xf32>
    %36 = vector.multi_reduction <add>, %35, %cst_23 [1] : vector<128x128xf32> to vector<128xf32>
    %37 = vector.shape_cast %36 : vector<128xf32> to vector<128x1xf32>
    %38 = arith.addf %31, %37 : vector<128x1xf32>
    %c0_24 = arith.constant 0 : index
    %c0_25 = arith.constant 0 : index
    %39 = vector.load %arg12[%c0_24, %c0_25] : memref<128x1xf32, #tpu.memory_space<vmem>>, vector<128x1xf32>
    tpu.vector_store %arg12[%c0_24, %c0_25], %38 {strides = array<i32>} : memref<128x1xf32, #tpu.memory_space<vmem>>, vector<128x1xf32>,
    %c0_26 = arith.constant 0 : index
    %c0_27 = arith.constant 0 : index
    %40 = vector.load %arg10[%c0_26, %c0_27] : memref<128x1xf32, #tpu.memory_space<vmem>>, vector<128x1xf32>
    tpu.vector_store %arg10[%c0_26, %c0_27], %18 {strides = array<i32>} : memref<128x1xf32, #tpu.memory_space<vmem>>, vector<128x1xf32>,
    %c0_i32_28 = arith.constant 0 : i32
    %41 = arith.cmpi eq, %arg1, %c0_i32_28 : i32
    %42 = arith.extui %41 : i1 to i32
    %c0_i32_29 = arith.constant 0 : i32
    %43 = arith.cmpi ne, %42, %c0_i32_29 : i32
    scf.if %43 {
      %c0_30 = arith.constant 0 : index
      %c0_31 = arith.constant 0 : index
      %44 = vector.load %arg10[%c0_30, %c0_31] : memref<128x1xf32, #tpu.memory_space<vmem>>, vector<128x1xf32>
      %c0_32 = arith.constant 0 : index
      %c0_33 = arith.constant 0 : index
      %45 = vector.load %arg11[%c0_32, %c0_33] : memref<128x1xf32, #tpu.memory_space<vmem>>, vector<128x1xf32>
      %46 = math.log %45 : vector<128x1xf32>
      %47 = arith.addf %44, %46 : vector<128x1xf32>
      %c0_34 = arith.constant 0 : index
      %c0_35 = arith.constant 0 : index
      %48 = vector.load %arg12[%c0_34, %c0_35] : memref<128x1xf32, #tpu.memory_space<vmem>>, vector<128x1xf32>
      %49 = arith.subf %47, %48 : vector<128x1xf32>
      %c0_36 = arith.constant 0 : index
      %c0_37 = arith.constant 0 : index
      %50 = vector.load %arg8[%c0_36, %c0_37] : memref<128x1xf32, #tpu.memory_space<vmem>>, vector<128x1xf32>
      tpu.vector_store %arg8[%c0_36, %c0_37], %49 {strides = array<i32>} : memref<128x1xf32, #tpu.memory_space<vmem>>, vector<128x1xf32>,
    } else {
    }
    return
  }
  func.func @transform_0(%arg0: i32, %arg1: i32, %arg2: memref<128xi32, #tpu.memory_space<smem>>) -> (i32, i32) {
    %c0_i32 = arith.constant 0 : i32
    %c0_i32_0 = arith.constant 0 : i32
    return %arg0, %c0_i32 : i32, i32
  }
  func.func @transform_1(%arg0: i32, %arg1: i32, %arg2: memref<128xi32, #tpu.memory_space<smem>>) -> (i32, i32) {
    %c0_i32 = arith.constant 0 : i32
    %c0_i32_0 = arith.constant 0 : i32
    %c0_i32_1 = arith.constant 0 : i32
    return %c0_i32, %c0_i32_0 : i32, i32
  }
  func.func @transform_2(%arg0: i32, %arg1: i32, %arg2: memref<128xi32, #tpu.memory_space<smem>>) -> (i32, i32) {
    %c0_i32 = arith.constant 0 : i32
    %c0_i32_0 = arith.constant 0 : i32
    return %c0_i32, %arg1 : i32, i32
  }
  func.func @transform_3(%arg0: i32, %arg1: i32, %arg2: memref<128xi32, #tpu.memory_space<smem>>) -> (i32, i32) {
    %c0_i32 = arith.constant 0 : i32
    %c0_i32_0 = arith.constant 0 : i32
    return %c0_i32, %arg1 : i32, i32
  }
  func.func @transform_4(%arg0: i32, %arg1: i32, %arg2: memref<128xi32, #tpu.memory_space<smem>>) -> (i32, i32) {
    %c0_i32 = arith.constant 0 : i32
    return %arg0, %arg1 : i32, i32
  }
  func.func @transform_5(%arg0: i32, %arg1: i32, %arg2: memref<128xi32, #tpu.memory_space<smem>>) -> (i32, i32) {
    %c0_i32 = arith.constant 0 : i32
    %c0_i32_0 = arith.constant 0 : i32
    return %arg0, %c0_i32 : i32, i32
  }
}

</mosaic_0001>

<bundles_post_ra>
// kernel: _bigram_fwd.1
= control target key start
LH: loop header
LB: loop body
LE: loop exit
PB: predicated region body
PF: predicated region fallthrough
CT: control target
= control target key end

     0   :  { %s1091_s24 = smov [#allocation7]   ;;  %s1794_s0 = inlined_call_operand.vmem [shape: s32[128], index: 0, kind: input, shape index: {}]   ;;  %s1795_s1 = inlined_call_operand.vmem [shape: s32[128,1], index: 1, kind: input, shape index: {}]   ;;  %s1796_s2 = inlined_call_operand.vmem [shape: f32[64,32], index: 2, kind: input, shape index: {}]   ;;  %s1797_s3 = inlined_call_operand.vmem [shape: f32[32,128], index: 3, kind: input, shape index: {}]   ;;  %s1798_s4 = inlined_call_operand.vmem [shape: f32[1,128], index: 4, kind: input, shape index: {}]   ;;  %s1799_s5 = inlined_call_operand.vmem [shape: f32[128,128], index: 5, kind: output, shape index: {0}]   ;;  %s1800_s6 = inlined_call_operand.vmem [shape: f32[128,1], index: 6, kind: output, shape index: {1}]  }
   0x1   :  { %s13_s23 = sshll.u32 %s1794_s0, 4  ;;  %s14_s23 = int_to_ptr.vmem [resolvable:$true] %s13_s23 }
   0x2   :  { %16 = dma.vmem_to_smem %s14_s23, 16, %s1091_s24, [#allocation6] }
   0x3   :  { %1085 = dma.done.wait [#allocation6], 16 }
   0x4   :  { %1086 = vsyncadd [#allocation6], 4294967280 }
   0x5   :  { %19 = sfence }
   0x6   :  { %s1087_s25 = smov 0  }
   0x7 LB: > { %s40_s26 = sld [smem:[#allocation7 + %s1089_s25]]  ;;  %vm44_vm0 = vcmask 253952   ;;  %s43_s30 = scalar_lea.vmem [#allocation2], %s1089_s25  ;;  %s1089_s25 = sphi %s1087_s25, %s38_s25  }
   0x8   : > { %s38_s25 = sadd.s32 1, %s1089_s25  }
   0x9   : > { %p35_p0 = scmp.ge.s32.totalorder %s38_s25, 128  }
   0xa   :  { %v114_v1 = vld [vmem:[%s1797_s3 + $0x18] sm:$0xff] (%p35_p0)  ;;  %v1092_v2 = vmov (%p35_p0), 0   ;;  %v249_v3 = vld [vmem:[%s1795_s1] sm:$0xff] (%p35_p0)  ;;  %v251_v4 = vld [vmem:[%s1795_s1 + $0x10] sm:$0xff] (%p35_p0)  ;;  %vm119_vm1 = vcmask (%p35_p0), 261120   ;;  %v266_v43 = vlaneseq (%p35_p0)  ;;  %vm46_vm15 = vcmask (%p35_p0), 7168  }
   0xb   :  { %37 = sbr.rel (!%p35_p0) target bundleno = 7 (0x7), region = 61  ;;  %969 = vset.pattern.permute.xlu1 (%p35_p0), %v1092_v2  ;;  %180 = vmatpush.msra.mxu0 (%p35_p0), %v114_v1  ;;  %v113_v5 = vld [vmem:[%s1797_s3 + $0x10] sm:$0xff] (%p35_p0)  ;;  %v112_v6 = vld [vmem:[%s1797_s3 + $0x8] sm:$0xff] (%p35_p0)  ;;  %v111_v7 = vld [vmem:[%s1797_s3] sm:$0xff] (%p35_p0) }
   0xc   :  { %945 = vmatpush.msra.mxu1 (%p35_p0), %v114_v1  ;;  %946 = vmatpush.msra.mxu2 (%p35_p0), %v114_v1  ;;  %v252_v12 = vld [vmem:[%s1795_s1 + $0x18] sm:$0xff] (%p35_p0)  ;;  %v253_v13 = vld [vmem:[%s1795_s1 + $0x20] sm:$0xff] (%p35_p0)  ;;  %v250_v14 = vld [vmem:[%s1795_s1 + $0x8] sm:$0xff] (%p35_p0)  ;;  %v1218_v46 = vand.u32 (%p35_p0), 127, %v266_v43 }
   0xd   : > { %s41_s29 = scalar_lea.vmem %s1796_s2, %s40_s26  ;;  %947 = vmatpush.msra.mxu3 (%p35_p0), %v114_v1  ;;  %971 = vset.pattern.permute.xlu0 (%p35_p0), %v1092_v2  ;;  %v255_v19 = vld [vmem:[%s1795_s1 + $0x30] sm:$0xff] (%p35_p0)  ;;  %v256_v20 = vld [vmem:[%s1795_s1 + $0x38] sm:$0xff] (%p35_p0)  ;;  %v254_v21 = vld [vmem:[%s1795_s1 + $0x28] sm:$0xff] (%p35_p0) }
   0xe   : > { %v42_v0 = vld [vmem:[%s41_s29] sm:$0x1]  ;;  %624 = vperm.xlu1 (%p35_p0), %969, %v249_v3   ;;  %630 = vperm.xlu0 (%p35_p0), %971, %v251_v4   ;;  %v258_v26 = vld [vmem:[%s1795_s1 + $0x48] sm:$0xff] (%p35_p0)  ;;  %v259_v27 = vld [vmem:[%s1795_s1 + $0x50] sm:$0xff] (%p35_p0) }
   0xf   : > { %45 = vst.msk [vmem:[%s43_s30] sm:$0x1] %vm44_vm0, %v42_v0  ;;  %181 = vmatpush.msra.mxu0 (%p35_p0), %v113_v5  ;;  %948 = vmatpush.msra.mxu1 (%p35_p0), %v113_v5  ;;  %v257_v28 = vld [vmem:[%s1795_s1 + $0x40] sm:$0xff] (%p35_p0)  ;;  %v262_v34 = vld [vmem:[%s1795_s1 + $0x68] sm:$0xff] (%p35_p0)  ;;  %v260_v35 = vld [vmem:[%s1795_s1 + $0x58] sm:$0xff] (%p35_p0) }
  0x10   :  { %949 = vmatpush.msra.mxu2 %v113_v5  ;;  %950 = vmatpush.msra.mxu3 %v113_v5  ;;  %v261_v33 = vld [vmem:[%s1795_s1 + $0x60] sm:$0xff]  ;;  %v264_v36 = vld [vmem:[%s1795_s1 + $0x78] sm:$0xff]  ;;  %v263_v37 = vld [vmem:[%s1795_s1 + $0x70] sm:$0xff] }
  0x11   :  { %182 = vmatpush.msra.mxu0 %v112_v6  ;;  %951 = vmatpush.msra.mxu1 %v112_v6  ;;  %v1227_v48 = vld [vmem:[%s1798_s4] ss:$0 sm:$0xff] }
  0x12   :  { %952 = vmatpush.msra.mxu2 %v112_v6  ;;  %953 = vmatpush.msra.mxu3 %v112_v6 }
  0x13   :  { %183 = vmatpush.msra.mxu0 %v111_v7  ;;  %954 = vmatpush.msra.mxu1 %v111_v7 }
  0x14   :  { %955 = vmatpush.msra.mxu2 %v111_v7  ;;  %956 = vmatpush.msra.mxu3 %v111_v7 }
  0x15   :  { %970 = vset.pattern.permute.xlu2 %v1092_v2 }
  0x16   :  { %v95_v8 = vld [vmem:[#allocation2] sm:$0xff]  ;;  %633 = vperm.xlu1 %969, %v252_v12   ;;  %636 = vperm.xlu0 %971, %v253_v13   ;;  %v96_v15 = vld [vmem:[#allocation2 + $0x8] sm:$0xff]  ;;  %v97_v22 = vld [vmem:[#allocation2 + $0x10] sm:$0xff] }
  0x17   :  { %v99_v9 = vld [vmem:[#allocation2 + $0x20] sm:$0xff]  ;;  %929 = vmatmul.msk.f32.vlgmr.msra.gmra.mxu0 %vm119_vm1, %v95_v8  ;;  %627 = vperm.xlu2 %970, %v250_v14   ;;  %v100_v16 = vld [vmem:[#allocation2 + $0x28] sm:$0xff]  ;;  %v101_v23 = vld [vmem:[#allocation2 + $0x30] sm:$0xff] }
  0x18   :  { %v103_v10 = vld [vmem:[#allocation2 + $0x40] sm:$0xff]  ;;  %933 = vmatmul.msk.f32.vlgmr.msra.gmra.mxu1 %vm119_vm1, %v99_v9  ;;  %v104_v17 = vld [vmem:[#allocation2 + $0x48] sm:$0xff]  ;;  %v105_v24 = vld [vmem:[#allocation2 + $0x50] sm:$0xff] }
  0x19   :  { %v107_v11 = vld [vmem:[#allocation2 + $0x60] sm:$0xff]  ;;  %937 = vmatmul.msk.f32.vlgmr.msra.gmra.mxu2 %vm119_vm1, %v103_v10  ;;  %v108_v18 = vld [vmem:[#allocation2 + $0x68] sm:$0xff]  ;;  %v109_v25 = vld [vmem:[#allocation2 + $0x70] sm:$0xff] }
  0x1a   :  { %941 = vmatmul.msk.f32.vlgmr.msra.gmra.mxu3 %vm119_vm1, %v107_v11  ;;  %v98_v29 = vld [vmem:[#allocation2 + $0x18] sm:$0xff] }
  0x1b   :  { %v102_v30 = vld [vmem:[#allocation2 + $0x38] sm:$0xff] }
  0x1c   :  { %v106_v31 = vld [vmem:[#allocation2 + $0x58] sm:$0xff] }
  0x1d   :  { %v110_v32 = vld [vmem:[#allocation2 + $0x78] sm:$0xff] }
  0x1e   :  { %642 = vperm.xlu1 %969, %v255_v19   ;;  %645 = vperm.xlu0 %971, %v256_v20  }
  0x1f   :  { %930 = vmatmul.msk.f32.gmra.mxu0 %vm119_vm1, %v96_v15  ;;  %639 = vperm.xlu2 %970, %v254_v21  }
  0x20   :  { %934 = vmatmul.msk.f32.gmra.mxu1 %vm119_vm1, %v100_v16 }
  0x21   :  { %938 = vmatmul.msk.f32.gmra.mxu2 %vm119_vm1, %v104_v17 }
  0x22   :  { %942 = vmatmul.msk.f32.gmra.mxu3 %vm119_vm1, %v108_v18 }
  0x26   :  { %651 = vperm.xlu1 %969, %v258_v26   ;;  %654 = vperm.xlu0 %971, %v259_v27  }
  0x27   :  { %931 = vmatmul.msk.f32.gmra.mxu0 %vm119_vm1, %v97_v22  ;;  %648 = vperm.xlu2 %970, %v257_v28  }
  0x28   :  { %935 = vmatmul.msk.f32.gmra.mxu1 %vm119_vm1, %v101_v23 }
  0x29   :  { %939 = vmatmul.msk.f32.gmra.mxu2 %vm119_vm1, %v105_v24 }
  0x2a   :  { %943 = vmatmul.msk.f32.gmra.mxu3 %vm119_vm1, %v109_v25 }
  0x2e   :  { %660 = vperm.xlu1 %969, %v261_v33   ;;  %663 = vperm.xlu0 %971, %v262_v34   ;;  %v1094_v33 = vmov 0.0  }
  0x2f   :  { %932 = vmatmul.msk.f32.gmra.mxu0 %vm119_vm1, %v98_v29  ;;  %657 = vperm.xlu2 %970, %v260_v35   ;;  %87 = vst.msk [vmem:[#allocation5 + $0x40] sm:$0xff] %vm46_vm15, %v1094_v33 }
  0x30   :  { %936 = vmatmul.msk.f32.gmra.mxu1 %vm119_vm1, %v102_v30  ;;  %63 = vst.msk [vmem:[#allocation4] sm:$0xff] %vm46_vm15, %v1094_v33 }
  0x31   :  { %940 = vmatmul.msk.f32.gmra.mxu2 %vm119_vm1, %v106_v31  ;;  %64 = vst.msk [vmem:[#allocation4 + $0x8] sm:$0xff] %vm46_vm15, %v1094_v33 }
  0x32   :  { %944 = vmatmul.msk.f32.gmra.mxu3 %vm119_vm1, %v110_v32  ;;  %v1093_v32 = vmov -inf   ;;  %65 = vst.msk [vmem:[#allocation4 + $0x10] sm:$0xff] %vm46_vm15, %v1094_v33 }
  0x33   :  { %51 = vst.msk [vmem:[#allocation3 + $0x20] sm:$0xff] %vm46_vm15, %v1093_v32 }
  0x34   :  { %47 = vst.msk [vmem:[#allocation3] sm:$0xff] %vm46_vm15, %v1093_v32 }
  0x35   :  { %48 = vst.msk [vmem:[#allocation3 + $0x8] sm:$0xff] %vm46_vm15, %v1093_v32 }
  0x36   :  { %669 = vperm.xlu1 %969, %v264_v36   ;;  %49 = vst.msk [vmem:[#allocation3 + $0x10] sm:$0xff] %vm46_vm15, %v1093_v32 }
  0x37   :  { %666 = vperm.xlu2 %970, %v263_v37   ;;  %50 = vst.msk [vmem:[#allocation3 + $0x18] sm:$0xff] %vm46_vm15, %v1093_v32 }
  0x38   :  { %52 = vst.msk [vmem:[#allocation3 + $0x28] sm:$0xff] %vm46_vm15, %v1093_v32 }
  0x39   :  { %53 = vst.msk [vmem:[#allocation3 + $0x30] sm:$0xff] %vm46_vm15, %v1093_v32 }
  0x3a   :  { %54 = vst.msk [vmem:[#allocation3 + $0x38] sm:$0xff] %vm46_vm15, %v1093_v32  ;;  %v1439_v36 = vld [vmem:[#allocation3 + $0x20] sm:$0xff] }
  0x3b   :  { %55 = vst.msk [vmem:[#allocation3 + $0x40] sm:$0xff] %vm46_vm15, %v1093_v32  ;;  %v1441_v37 = vld [vmem:[#allocation3] sm:$0xff] }
  0x3c   :  { %56 = vst.msk [vmem:[#allocation3 + $0x48] sm:$0xff] %vm46_vm15, %v1093_v32 }
  0x3d   :  { %57 = vst.msk [vmem:[#allocation3 + $0x50] sm:$0xff] %vm46_vm15, %v1093_v32 }
  0x3e   :  { %58 = vst.msk [vmem:[#allocation3 + $0x58] sm:$0xff] %vm46_vm15, %v1093_v32 }
  0x3f   :  { %59 = vst.msk [vmem:[#allocation3 + $0x60] sm:$0xff] %vm46_vm15, %v1093_v32 }
  0x40   :  { %60 = vst.msk [vmem:[#allocation3 + $0x68] sm:$0xff] %vm46_vm15, %v1093_v32 }
  0x41   :  { %61 = vst.msk [vmem:[#allocation3 + $0x70] sm:$0xff] %vm46_vm15, %v1093_v32 }
  0x42   :  { %62 = vst.msk [vmem:[#allocation3 + $0x78] sm:$0xff] %vm46_vm15, %v1093_v32 }
  0x43   :  { %66 = vst.msk [vmem:[#allocation4 + $0x18] sm:$0xff] %vm46_vm15, %v1094_v33 }
  0x44   :  { %67 = vst.msk [vmem:[#allocation4 + $0x20] sm:$0xff] %vm46_vm15, %v1094_v33 }
  0x45   :  { %68 = vst.msk [vmem:[#allocation4 + $0x28] sm:$0xff] %vm46_vm15, %v1094_v33 }
  0x46   :  { %69 = vst.msk [vmem:[#allocation4 + $0x30] sm:$0xff] %vm46_vm15, %v1094_v33 }
  0x47   :  { %70 = vst.msk [vmem:[#allocation4 + $0x38] sm:$0xff] %vm46_vm15, %v1094_v33 }
  0x48   :  { %71 = vst.msk [vmem:[#allocation4 + $0x40] sm:$0xff] %vm46_vm15, %v1094_v33 }
  0x49   :  { %72 = vst.msk [vmem:[#allocation4 + $0x48] sm:$0xff] %vm46_vm15, %v1094_v33 }
  0x4a   :  { %73 = vst.msk [vmem:[#allocation4 + $0x50] sm:$0xff] %vm46_vm15, %v1094_v33 }
  0x4b   :  { %74 = vst.msk [vmem:[#allocation4 + $0x58] sm:$0xff] %vm46_vm15, %v1094_v33 }
  0x4c   :  { %75 = vst.msk [vmem:[#allocation4 + $0x60] sm:$0xff] %vm46_vm15, %v1094_v33 }
  0x4d   :  { %76 = vst.msk [vmem:[#allocation4 + $0x68] sm:$0xff] %vm46_vm15, %v1094_v33 }
  0x4e   :  { %77 = vst.msk [vmem:[#allocation4 + $0x70] sm:$0xff] %vm46_vm15, %v1094_v33 }
  0x4f   :  { %78 = vst.msk [vmem:[#allocation4 + $0x78] sm:$0xff] %vm46_vm15, %v1094_v33 }
  0x50   :  { %79 = vst.msk [vmem:[#allocation5] sm:$0xff] %vm46_vm15, %v1094_v33 }
  0x51   :  { %80 = vst.msk [vmem:[#allocation5 + $0x8] sm:$0xff] %vm46_vm15, %v1094_v33 }
  0x52   :  { %81 = vst.msk [vmem:[#allocation5 + $0x10] sm:$0xff] %vm46_vm15, %v1094_v33 }
  0x53   :  { %82 = vst.msk [vmem:[#allocation5 + $0x18] sm:$0xff] %vm46_vm15, %v1094_v33 }
  0x54   :  { %83 = vst.msk [vmem:[#allocation5 + $0x20] sm:$0xff] %vm46_vm15, %v1094_v33 }
  0x55   :  { %84 = vst.msk [vmem:[#allocation5 + $0x28] sm:$0xff] %vm46_vm15, %v1094_v33 }
  0x56   :  { %85 = vst.msk [vmem:[#allocation5 + $0x30] sm:$0xff] %vm46_vm15, %v1094_v33 }
  0x57   :  { %86 = vst.msk [vmem:[#allocation5 + $0x38] sm:$0xff] %vm46_vm15, %v1094_v33 }
  0x58   :  { %88 = vst.msk [vmem:[#allocation5 + $0x48] sm:$0xff] %vm46_vm15, %v1094_v33 }
  0x59   :  { %89 = vst.msk [vmem:[#allocation5 + $0x50] sm:$0xff] %vm46_vm15, %v1094_v33 }
  0x5a   :  { %90 = vst.msk [vmem:[#allocation5 + $0x58] sm:$0xff] %vm46_vm15, %v1094_v33 }
  0x5b   :  { %91 = vst.msk [vmem:[#allocation5 + $0x60] sm:$0xff] %vm46_vm15, %v1094_v33 }
  0x5c   :  { %92 = vst.msk [vmem:[#allocation5 + $0x68] sm:$0xff] %vm46_vm15, %v1094_v33 }
  0x5d   :  { %93 = vst.msk [vmem:[#allocation5 + $0x70] sm:$0xff] %vm46_vm15, %v1094_v33 }
  0x5e   :  { %94 = vst.msk [vmem:[#allocation5 + $0x78] sm:$0xff] %vm46_vm15, %v1094_v33  ;;  %v1525_v33 = vld [vmem:[#allocation3 + $0x10] sm:$0xff] }
  0x71   :  { %v1212_v38 = vpop.permute.xlu2 %627 }
  0x72   :  { %vm672_vm9 = vcmp.eq.s32.totalorder %v1218_v46, %v1212_v38 }
  0x79   :  { %v640_v39 = vpop.permute.xlu2 %639 }
  0x7a   :  { %vm676_vm7 = vcmp.eq.s32.totalorder %v1218_v46, %v640_v39 }
  0x80   :  { %v625_v40 = vpop.permute.xlu1 %624  ;;  %v1214_v41 = vpop.permute.xlu0 %630 }
  0x81   :  { %v649_v42 = vpop.permute.xlu2 %648  ;;  %vm671_vm5 = vcmp.eq.s32.totalorder %v1218_v46, %v625_v40  ;;  %vm673_vm10 = vcmp.eq.s32.totalorder %v1218_v46, %v1214_v41 }
  0x82   :  { %vm679_vm4 = vcmp.eq.s32.totalorder %v1218_v46, %v649_v42 }
  0x88   :  { %v1216_v44 = vpop.permute.xlu1 %633  ;;  %v637_v45 = vpop.permute.xlu0 %636 }
  0x89   :  { %v1220_v47 = vpop.permute.xlu2 %657  ;;  %vm675_vm3 = vcmp.eq.s32.totalorder %v1218_v46, %v637_v45  ;;  %vm674_vm14 = vcmp.eq.s32.totalorder %v1218_v46, %v1216_v44  ;;  %v615_v45 = vld [vmem:[#allocation5 + $0x40] sm:$0xff] }
  0x8a   :  { %vm682_vm2 = vcmp.eq.s32.totalorder %v1218_v46, %v1220_v47 }
  0x90   :  { %v1229_v49 = vpop.permute.xlu1 %642  ;;  %v1231_v50 = vpop.permute.xlu0 %645 }
  0x91   :  { %vm678_vm12 = vcmp.eq.s32.totalorder %v1218_v46, %v1231_v50  ;;  %vm677_vm13 = vcmp.eq.s32.totalorder %v1218_v46, %v1229_v49  ;;  %v1431_v35 = vpop.permute.xlu2 %666  ;;  %v607_v49 = vld [vmem:[#allocation5] sm:$0xff] }
  0x92   :  { %vm685_vm0 = vcmp.eq.s32.totalorder %v1218_v46, %v1431_v35 }
  0x94   :  { %v185_v51 = vpop.f32.mrf.mxu0 }
  0x95   :  { %v197_v52 = vpop.f32.mrf.mxu1  ;;  %v1234_v53 = vadd.f32 %v1227_v48, %v185_v51 }
  0x96   :  { %v1237_v54 = vadd.f32 %v1227_v48, %v197_v52 }
  0x97   :  { %233 = vst [vmem:[%s1799_s5] sm:$0xff] %v1234_v53  ;;  %286 = vmax.xlane.f32.xlu0 %v1234_v53  ;;  %v687_v3 = vsel %vm671_vm5, %v1234_v53, 0.0 }
  0x98   :  { %294 = vmax.xlane.f32.xlu2 %v1237_v54  ;;  %237 = vst [vmem:[%s1799_s5 + $0x20] sm:$0xff] %v1237_v54  ;;  %v1255_v58 = vpop.permute.xlu1 %651  ;;  %v1257_v59 = vpop.permute.xlu0 %654  ;;  %v691_v60 = vsel %vm675_vm3, %v1237_v54, 0.0 }
  0x99   :  { %vm681_vm6 = vcmp.eq.s32.totalorder %v1218_v46, %v1257_v59  ;;  %vm680_vm11 = vcmp.eq.s32.totalorder %v1218_v46, %v1255_v58 }
  0x9c   :  { %v209_v55 = vpop.f32.mrf.mxu2  ;;  %v188_v62 = vpop.f32.mrf.mxu0 }
  0x9d   :  { %v221_v56 = vpop.f32.mrf.mxu3  ;;  %v1253_v57 = vadd.f32 %v1227_v48, %v209_v55  ;;  %v200_v63 = vpop.f32.mrf.mxu1  ;;  %v1270_v0 = vadd.f32 %v1227_v48, %v188_v62  ;;  %v1476_v62 = vld [vmem:[#allocation3 + $0x40] sm:$0xff] }
  0x9e   :  { %v1261_v61 = vadd.f32 %v1227_v48, %v221_v56  ;;  %v1278_v2 = vadd.f32 %v1227_v48, %v200_v63  ;;  %v1478_v63 = vld [vmem:[#allocation3 + $0x60] sm:$0xff] }
  0x9f   :  { %241 = vst [vmem:[%s1799_s5 + $0x40] sm:$0xff] %v1253_v57  ;;  %v695_v1 = vsel %vm679_vm4, %v1253_v57, 0.0  ;;  %703 = vadd.xlane.f32.xlu0 %v687_v3  ;;  %v688_v26 = vsel %vm672_vm9, %v1270_v0, 0.0 }
  0xa0   :  { %245 = vst [vmem:[%s1799_s5 + $0x60] sm:$0xff] %v1261_v61  ;;  %719 = vadd.xlane.f32.xlu1 %v695_v1  ;;  %711 = vadd.xlane.f32.xlu2 %v691_v60  ;;  %v1295_v7 = vpop.permute.xlu1 %660  ;;  %v692_v8 = vsel %vm676_vm7, %v1278_v2, 0.0  ;;  %v1429_v34 = vpop.permute.xlu0 %663  ;;  %v612_v60 = vld [vmem:[#allocation5 + $0x28] sm:$0xff] }
  0xa1   :  { %234 = vst [vmem:[%s1799_s5 + $0x8] sm:$0xff] %v1270_v0  ;;  %vm683_vm8 = vcmp.eq.s32.totalorder %v1218_v46, %v1295_v7  ;;  %vm684_vm1 = vcmp.eq.s32.totalorder %v1218_v46, %v1429_v34  ;;  %v334_v34 = vld [vmem:[#allocation4] sm:$0xff] }
  0xa2   :  { %238 = vst [vmem:[%s1799_s5 + $0x28] sm:$0xff] %v1278_v2 }
  0xa4   :  { %v212_v4 = vpop.f32.mrf.mxu2  ;;  %v191_v10 = vpop.f32.mrf.mxu0 }
  0xa5   :  { %v224_v5 = vpop.f32.mrf.mxu3  ;;  %v1293_v6 = vadd.f32 %v1227_v48, %v212_v4  ;;  %v203_v11 = vpop.f32.mrf.mxu1  ;;  %v1308_v12 = vadd.f32 %v1227_v48, %v191_v10 }
  0xa6   :  { %v1299_v9 = vadd.f32 %v1227_v48, %v224_v5  ;;  %v1315_v13 = vadd.f32 %v1227_v48, %v203_v11 }
  0xa7   :  { %242 = vst [vmem:[%s1799_s5 + $0x48] sm:$0xff] %v1293_v6  ;;  %310 = vmax.xlane.f32.xlu0 %v1261_v61  ;;  %v689_v27 = vsel %vm673_vm10, %v1308_v12, 0.0  ;;  %v696_v28 = vsel %vm680_vm11, %v1293_v6, 0.0 }
  0xa8   :  { %246 = vst [vmem:[%s1799_s5 + $0x68] sm:$0xff] %v1299_v9  ;;  %713 = vadd.xlane.f32.xlu1 %v692_v8  ;;  %302 = vmax.xlane.f32.xlu2 %v1253_v57  ;;  %v693_v30 = vsel %vm677_vm13, %v1315_v13, 0.0  ;;  %v1444_v38 = vpop.permute.xlu1 %669 }
  0xa9   :  { %235 = vst [vmem:[%s1799_s5 + $0x10] sm:$0xff] %v1308_v12 }
  0xaa   :  { %239 = vst [vmem:[%s1799_s5 + $0x30] sm:$0xff] %v1315_v13 }
  0xac   :  { %v215_v14 = vpop.f32.mrf.mxu2  ;;  %v194_v18 = vpop.f32.mrf.mxu0 }
  0xad   :  { %v227_v15 = vpop.f32.mrf.mxu3  ;;  %v1328_v16 = vadd.f32 %v1227_v48, %v215_v14  ;;  %v206_v19 = vpop.f32.mrf.mxu1  ;;  %v1338_v20 = vadd.f32 %v1227_v48, %v194_v18  ;;  %v1499_v18 = vld [vmem:[#allocation3 + $0x28] sm:$0xff] }
  0xae   :  { %v1331_v17 = vadd.f32 %v1227_v48, %v227_v15  ;;  %v1345_v21 = vadd.f32 %v1227_v48, %v206_v19  ;;  %v1497_v15 = vld [vmem:[#allocation3 + $0x68] sm:$0xff] }
  0xaf   :  { %243 = vst [vmem:[%s1799_s5 + $0x50] sm:$0xff] %v1328_v16  ;;  %288 = vmax.xlane.f32.xlu0 %v1270_v0  ;;  %v690_v31 = vsel %vm674_vm14, %v1338_v20, 0.0  ;;  %v1501_v19 = vld [vmem:[#allocation3 + $0x8] sm:$0xff] }
  0xb0   :  { %247 = vst [vmem:[%s1799_s5 + $0x70] sm:$0xff] %v1331_v17  ;;  %312 = vmax.xlane.f32.xlu1 %v1299_v9  ;;  %296 = vmax.xlane.f32.xlu2 %v1278_v2  ;;  %v694_v29 = vsel %vm678_vm12, %v1345_v21, 0.0 }
  0xb1   :  { %236 = vst [vmem:[%s1799_s5 + $0x18] sm:$0xff] %v1338_v20 }
  0xb2   :  { %240 = vst [vmem:[%s1799_s5 + $0x38] sm:$0xff] %v1345_v21 }
  0xb4   :  { %v218_v22 = vpop.f32.mrf.mxu2 }
  0xb5   :  { %v230_v23 = vpop.f32.mrf.mxu3  ;;  %v1361_v24 = vadd.f32 %v1227_v48, %v218_v22 }
  0xb6   :  { %v1364_v25 = vadd.f32 %v1227_v48, %v230_v23  ;;  %v611_v48 = vld [vmem:[#allocation5 + $0x20] sm:$0xff] }
  0xb7   :  { %244 = vst [vmem:[%s1799_s5 + $0x58] sm:$0xff] %v1361_v24  ;;  %304 = vmax.xlane.f32.xlu0 %v1293_v6 }
  0xb8   :  { %248 = vst [vmem:[%s1799_s5 + $0x78] sm:$0xff] %v1364_v25  ;;  %290 = vmax.xlane.f32.xlu1 %v1308_v12  ;;  %705 = vadd.xlane.f32.xlu2 %v688_v26 }
  0xbf   :  { %721 = vadd.xlane.f32.xlu0 %v696_v28 }
  0xc0   :  { %707 = vadd.xlane.f32.xlu1 %v689_v27  ;;  %314 = vmax.xlane.f32.xlu2 %v1331_v17 }
  0xc7   :  { %298 = vmax.xlane.f32.xlu0 %v1315_v13 }
  0xc8   :  { %306 = vmax.xlane.f32.xlu1 %v1328_v16  ;;  %717 = vadd.xlane.f32.xlu2 %v694_v29 }
  0xcf   :  { %715 = vadd.xlane.f32.xlu0 %v693_v30 }
  0xd0   :  { %292 = vmax.xlane.f32.xlu1 %v1338_v20  ;;  %308 = vmax.xlane.f32.xlu2 %v1361_v24 }
  0xd7   :  { %709 = vadd.xlane.f32.xlu0 %v690_v31 }
  0xd8   :  { %300 = vmax.xlane.f32.xlu1 %v1345_v21 }
  0xdf   :  { %316 = vmax.xlane.f32.xlu0 %v1364_v25 }
 0x10a   :  { %v287_v40 = vpop.xlane.xlu0 %286 }
 0x10b   :  { %v295_v39 = vpop.xlane.xlu2 %294  ;;  %v1452_v42 = vmax.f32 %v1441_v37, %v287_v40  ;;  %v1527_v40 = vld [vmem:[#allocation3 + $0x48] sm:$0xff] }
 0x10c   :  { %v1449_v41 = vmax.f32 %v1439_v36, %v295_v39  ;;  %v608_v39 = vld [vmem:[#allocation5 + $0x8] sm:$0xff] }
 0x10d   :  { %416 = vperm.xlu1 %969, %v1452_v42   ;;  %767 = vst.msk [vmem:[#allocation3] sm:$0xff] %vm46_vm15, %v1452_v42 }
 0x10e   :  { %771 = vst.msk [vmem:[#allocation3 + $0x20] sm:$0xff] %vm46_vm15, %v1449_v41  ;;  %v1814_v59 = vsub.f32 %v1439_v36, %v1449_v41 }
 0x112   :  { %v704_v56 = vpop.xlane.xlu0 %703 }
 0x113   :  { %v720_v50 = vpop.xlane.xlu1 %719  ;;  %v712_v51 = vpop.xlane.xlu2 %711  ;;  %v735_v58 = vadd.f32 %v704_v56, %v607_v49 }
 0x114   :  { %v743_v52 = vadd.f32 %v720_v50, %v615_v45  ;;  %v739_v55 = vadd.f32 %v712_v51, %v611_v48 }
 0x115   :  { %436 = vperm.xlu1 %969, %v1449_v41   ;;  %751 = vst.msk [vmem:[#allocation5] sm:$0xff] %vm46_vm15, %v735_v58  ;;  %v609_v58 = vld [vmem:[#allocation5 + $0x10] sm:$0xff]  ;;  %v338_v41 = vld [vmem:[#allocation4 + $0x20] sm:$0xff] }
 0x116   :  { %759 = vst.msk [vmem:[#allocation5 + $0x40] sm:$0xff] %vm46_vm15, %v743_v52 }
 0x117   :  { %755 = vst.msk [vmem:[#allocation5 + $0x20] sm:$0xff] %vm46_vm15, %v739_v55 }
 0x11a   :  { %v311_v8 = vpop.xlane.xlu0 %310 }
 0x11b   :  { %v714_v1 = vpop.xlane.xlu1 %713  ;;  %v303_v3 = vpop.xlane.xlu2 %302  ;;  %v1484_v10 = vmax.f32 %v1478_v63, %v311_v8 }
 0x11c   :  { %v740_v4 = vadd.f32 %v714_v1, %v612_v60  ;;  %v1481_v5 = vmax.f32 %v1476_v62, %v303_v3  ;;  %v1546_v60 = vld [vmem:[#allocation3 + $0x70] sm:$0xff]  ;;  %v616_v1 = vld [vmem:[#allocation5 + $0x48] sm:$0xff] }
 0x11d   :  { %476 = vperm.xlu0 %971, %v1484_v10   ;;  %779 = vst.msk [vmem:[#allocation3 + $0x60] sm:$0xff] %vm46_vm15, %v1484_v10 }
 0x11e   :  { %756 = vst.msk [vmem:[#allocation5 + $0x28] sm:$0xff] %vm46_vm15, %v740_v4  ;;  %456 = vperm.xlu1 %969, %v1481_v5  }
 0x11f   :  { %775 = vst.msk [vmem:[#allocation3 + $0x40] sm:$0xff] %vm46_vm15, %v1481_v5 }
 0x122   :  { %v289_v28 = vpop.xlane.xlu0 %288 }
 0x123   :  { %v313_v22 = vpop.xlane.xlu1 %312  ;;  %v297_v23 = vpop.xlane.xlu2 %296  ;;  %v1510_v29 = vmax.f32 %v1501_v19, %v289_v28 }
 0x124   :  { %v1504_v26 = vmax.f32 %v1497_v15, %v313_v22  ;;  %v1507_v27 = vmax.f32 %v1499_v18, %v297_v23 }
 0x125   :  { %421 = vperm.xlu2 %970, %v1510_v29   ;;  %768 = vst.msk [vmem:[#allocation3 + $0x8] sm:$0xff] %vm46_vm15, %v1510_v29 }
 0x126   :  { %780 = vst.msk [vmem:[#allocation3 + $0x68] sm:$0xff] %vm46_vm15, %v1504_v26 }
 0x127   :  { %772 = vst.msk [vmem:[#allocation3 + $0x28] sm:$0xff] %vm46_vm15, %v1507_v27 }
 0x12a   :  { %v305_v51 = vpop.xlane.xlu0 %304 }
 0x12b   :  { %v291_v45 = vpop.xlane.xlu1 %290  ;;  %v706_v48 = vpop.xlane.xlu2 %705  ;;  %v1533_v52 = vmax.f32 %v1527_v40, %v305_v51 }
 0x12c   :  { %v1530_v49 = vmax.f32 %v1525_v33, %v291_v45  ;;  %v736_v50 = vadd.f32 %v706_v48, %v608_v39  ;;  %v1559_v45 = vld [vmem:[#allocation3 + $0x50] sm:$0xff]  ;;  %v614_v48 = vld [vmem:[#allocation5 + $0x38] sm:$0xff] }
 0x12d   :  { %461 = vperm.xlu0 %971, %v1533_v52   ;;  %441 = vperm.xlu2 %970, %v1507_v27   ;;  %776 = vst.msk [vmem:[#allocation3 + $0x48] sm:$0xff] %vm46_vm15, %v1533_v52 }
 0x12e   :  { %769 = vst.msk [vmem:[#allocation3 + $0x10] sm:$0xff] %vm46_vm15, %v1530_v49 }
 0x12f   :  { %752 = vst.msk [vmem:[#allocation5 + $0x8] sm:$0xff] %vm46_vm15, %v736_v50  ;;  %v1561_v50 = vld [vmem:[#allocation3 + $0x30] sm:$0xff] }
 0x132   :  { %v722_v23 = vpop.xlane.xlu0 %721 }
 0x133   :  { %v708_v3 = vpop.xlane.xlu1 %707  ;;  %v315_v4 = vpop.xlane.xlu2 %314  ;;  %v744_v28 = vadd.f32 %v722_v23, %v616_v1 }
 0x134   :  { %v737_v8 = vadd.f32 %v708_v3, %v609_v58  ;;  %v1549_v22 = vmax.f32 %v1546_v60, %v315_v4 }
 0x135   :  { %426 = vperm.xlu0 %971, %v1530_v49   ;;  %481 = vperm.xlu2 %970, %v1504_v26   ;;  %760 = vst.msk [vmem:[#allocation5 + $0x48] sm:$0xff] %vm46_vm15, %v744_v28 }
 0x136   :  { %753 = vst.msk [vmem:[#allocation5 + $0x10] sm:$0xff] %vm46_vm15, %v737_v8 }
 0x137   :  { %781 = vst.msk [vmem:[#allocation3 + $0x70] sm:$0xff] %vm46_vm15, %v1549_v22 }
 0x13a   :  { %v299_v4 = vpop.xlane.xlu0 %298 }
 0x13b   :  { %v307_v51 = vpop.xlane.xlu1 %306  ;;  %v718_v58 = vpop.xlane.xlu2 %717  ;;  %v1567_v8 = vmax.f32 %v1561_v50, %v299_v4 }
 0x13c   :  { %v1564_v1 = vmax.f32 %v1559_v45, %v307_v51  ;;  %v742_v3 = vadd.f32 %v718_v58, %v614_v48  ;;  %v1580_v48 = vld [vmem:[#allocation3 + $0x18] sm:$0xff]  ;;  %v613_v58 = vld [vmem:[#allocation5 + $0x30] sm:$0xff] }
 0x13d   :  { %446 = vperm.xlu1 %969, %v1567_v8   ;;  %773 = vst.msk [vmem:[#allocation3 + $0x30] sm:$0xff] %vm46_vm15, %v1567_v8  ;;  %v1582_v51 = vld [vmem:[#allocation3 + $0x58] sm:$0xff] }
 0x13e   :  { %777 = vst.msk [vmem:[#allocation3 + $0x50] sm:$0xff] %vm46_vm15, %v1564_v1  ;;  %466 = vperm.xlu2 %970, %v1564_v1  }
 0x13f   :  { %758 = vst.msk [vmem:[#allocation5 + $0x38] sm:$0xff] %vm46_vm15, %v742_v3 }
 0x140   :  { %1807 = vst [vmem:[#allocation9_spill] sm:$0xff] %v1580_v48 }
 0x141   :  { %1808 = vst [vmem:[#allocation10_spill] sm:$0xff] %v1582_v51 }
 0x142   :  { %v716_v3 = vpop.xlane.xlu0 %715 }
 0x143   :  { %v293_v4 = vpop.xlane.xlu1 %292  ;;  %v309_v39 = vpop.xlane.xlu2 %308  ;;  %v741_v56 = vadd.f32 %v716_v3, %v613_v58  ;;  %v610_v58 = vld [vmem:[#allocation5 + $0x18] sm:$0xff] }
 0x144   :  { %v1585_v55 = vmax.f32 %v1580_v48, %v293_v4  ;;  %v1588_v28 = vmax.f32 %v1582_v51, %v309_v39  ;;  %v1601_v39 = vld [vmem:[#allocation3 + $0x38] sm:$0xff] }
 0x145   :  { %757 = vst.msk [vmem:[#allocation5 + $0x30] sm:$0xff] %vm46_vm15, %v741_v56  ;;  %486 = vperm.xlu1 %969, %v1549_v22   ;;  %v1613_v56 = vld [vmem:[#allocation3 + $0x78] sm:$0xff] }
 0x146   :  { %1809 = vst [vmem:[#allocation11_spill] sm:$0xff] %v1585_v55  ;;  %431 = vperm.xlu2 %970, %v1585_v55  }
 0x147   :  { %1810 = vst [vmem:[#allocation12_spill] sm:$0xff] %v1588_v28 }
 0x148   :  { %770 = vst.msk [vmem:[#allocation3 + $0x18] sm:$0xff] %vm46_vm15, %v1585_v55 }
 0x149   :  { %778 = vst.msk [vmem:[#allocation3 + $0x58] sm:$0xff] %vm46_vm15, %v1588_v28 }
 0x14a   :  { %v710_v23 = vpop.xlane.xlu0 %709  ;;  %1811 = vst [vmem:[#allocation13_spill] sm:$0xff] %v1613_v56 }
 0x14b   :  { %v301_v4 = vpop.xlane.xlu1 %300  ;;  %v738_v30 = vadd.f32 %v710_v23, %v610_v58 }
 0x14c   :  { %v1604_v3 = vmax.f32 %v1601_v39, %v301_v4 }
 0x14d   :  { %754 = vst.msk [vmem:[#allocation5 + $0x18] sm:$0xff] %vm46_vm15, %v738_v30  ;;  %471 = vperm.xlu1 %969, %v1588_v28  }
 0x14e   :  { %774 = vst.msk [vmem:[#allocation3 + $0x38] sm:$0xff] %vm46_vm15, %v1604_v3  ;;  %451 = vperm.xlu2 %970, %v1604_v3  }
 0x152   :  { %v317_v14 = vpop.xlane.xlu0 %316 }
 0x153   :  { %v1616_v4 = vmax.f32 %v1613_v56, %v317_v14 }
 0x155   :  { %1812 = vst [vmem:[#allocation14_spill] sm:$0xff] %v1616_v4  ;;  %491 = vperm.xlu0 %971, %v1616_v4  }
 0x156   :  { %782 = vst.msk [vmem:[#allocation3 + $0x78] sm:$0xff] %vm46_vm15, %v1616_v4 }
 0x17f   :  { %v417_v58 = vpop.permute.xlu1 %416  ;;  %v422_v30 = vpop.permute.xlu2 %421 }
 0x180   :  { %v494_v31 = vsub.f32 %v1234_v53, %v417_v58  ;;  %v495_v51 = vsub.f32 %v1270_v0, %v422_v30 }
 0x182   :  { %v510_v32 = vmul.f32 1.442695, %v494_v31  ;;  %v512_v23 = vmul.f32 1.442695, %v495_v51 }
 0x184   :  { %973 = vpow2.f32 %v510_v32 }
 0x187   :  { %v437_v11 = vpop.permute.xlu1 %436  ;;  %v442_v43 = vpop.permute.xlu2 %441 }
 0x188   :  { %v498_v44 = vsub.f32 %v1237_v54, %v437_v11  ;;  %v499_v58 = vsub.f32 %v1278_v2, %v442_v43 }
 0x18a   :  { %v974_v14 = vpop.eup %973  ;;  %v518_v28 = vmul.f32 1.442695, %v498_v44  ;;  %v520_v0 = vmul.f32 1.442695, %v499_v58 }
 0x18b   :  { %542 = vadd.xlane.f32.xlu2 %v974_v14 }
 0x18c   :  { %975 = vpow2.f32 %v518_v28 }
 0x18d   :  { %977 = vpow2.f32 %v512_v23 }
 0x18f   :  { %v477_v55 = vpop.permute.xlu0 %476  ;;  %v482_v4 = vpop.permute.xlu2 %481 }
 0x190   :  { %v457_v56 = vpop.permute.xlu1 %456  ;;  %v506_v53 = vsub.f32 %v1261_v61, %v477_v55  ;;  %v507_v44 = vsub.f32 %v1299_v9, %v482_v4 }
 0x191   :  { %v502_v48 = vsub.f32 %v1253_v57, %v457_v56 }
 0x192   :  { %v976_v31 = vpop.eup %975  ;;  %v534_v54 = vmul.f32 1.442695, %v506_v53  ;;  %v536_v11 = vmul.f32 1.442695, %v507_v44 }
 0x193   :  { %v526_v32 = vmul.f32 1.442695, %v502_v48  ;;  %550 = vadd.xlane.f32.xlu1 %v976_v31  ;;  %v978_v51 = vpop.eup %977 }
 0x195   :  { %979 = vpow2.f32 %v526_v32 }
 0x196   :  { %981 = vpow2.f32 %v534_v54 }
 0x197   :  { %983 = vpow2.f32 %v520_v0 }
 0x198   :  { %v467_v28 = vpop.permute.xlu2 %466  ;;  %985 = vpow2.f32 %v536_v11 }
 0x199   :  { %v504_v57 = vsub.f32 %v1328_v16, %v467_v28 }
 0x19b   :  { %v980_v30 = vpop.eup %979  ;;  %544 = vadd.xlane.f32.xlu1 %v978_v51  ;;  %v530_v2 = vmul.f32 1.442695, %v504_v57 }
 0x19c   :  { %v982_v14 = vpop.eup %981  ;;  %558 = vadd.xlane.f32.xlu2 %v980_v30 }
 0x19d   :  { %566 = vadd.xlane.f32.xlu0 %v982_v14  ;;  %v984_v48 = vpop.eup %983  ;;  %987 = vpow2.f32 %v530_v2 }
 0x19e   :  { %v986_v4 = vpop.eup %985 }
 0x19f   :  { %v462_v43 = vpop.permute.xlu0 %461 }
 0x1a0   :  { %v432_v55 = vpop.permute.xlu2 %431  ;;  %v503_v56 = vsub.f32 %v1293_v6, %v462_v43  ;;  %v698_v43 = vsel %vm682_vm2, %v1361_v24, 0.0  ;;  %vm686_vm2 = vcmp.eq.s32.totalorder %v1218_v46, %v1444_v38 }
 0x1a1   :  { %v702_v35 = vsel %vm686_vm2, %v1364_v25, 0.0 }
 0x1a2   :  { %v528_v23 = vmul.f32 1.442695, %v503_v56 }
 0x1a3   :  { %568 = vadd.xlane.f32.xlu1 %v986_v4  ;;  %v988_v54 = vpop.eup %987 }
 0x1a4   :  { %552 = vadd.xlane.f32.xlu2 %v984_v48  ;;  %989 = vpow2.f32 %v528_v23  ;;  %v497_v48 = vsub.f32 %v1338_v20, %v432_v55 }
 0x1a7   :  { %v427_v53 = vpop.permute.xlu0 %426 }
 0x1a8   :  { %v452_v31 = vpop.permute.xlu2 %451  ;;  %v496_v32 = vsub.f32 %v1308_v12, %v427_v53  ;;  %v701_v53 = vsel %vm685_vm0, %v1331_v17, 0.0 }
 0x1a9   :  { %v501_v58 = vsub.f32 %v1345_v21, %v452_v31 }
 0x1aa   :  { %v990_v44 = vpop.eup %989  ;;  %v514_v0 = vmul.f32 1.442695, %v496_v32 }
 0x1ab   :  { %v524_v11 = vmul.f32 1.442695, %v501_v58  ;;  %562 = vadd.xlane.f32.xlu1 %v988_v54  ;;  %560 = vadd.xlane.f32.xlu0 %v990_v44  ;;  %v700_v44 = vsel %vm684_vm1, %v1299_v9, 0.0 }
 0x1ac   :  { %991 = vpow2.f32 %v514_v0 }
 0x1ad   :  { %993 = vpow2.f32 %v524_v11 }
 0x1af   :  { %v447_v6 = vpop.permute.xlu1 %446 }
 0x1b0   :  { %v500_v28 = vsub.f32 %v1315_v13, %v447_v6  ;;  %v516_v13 = vmul.f32 1.442695, %v497_v48  ;;  %v1816_v6 = vsub.f32 %v1501_v19, %v1510_v29  ;;  %v1819_v19 = vsub.f32 %v1499_v18, %v1507_v27 }
 0x1b2   :  { %v992_v51 = vpop.eup %991  ;;  %v522_v30 = vmul.f32 1.442695, %v500_v28  ;;  %v376_v29 = vmul.f32 1.442695, %v1819_v19 }
 0x1b3   :  { %v994_v14 = vpop.eup %993  ;;  %546 = vadd.xlane.f32.xlu0 %v992_v51 }
 0x1b4   :  { %995 = vpow2.f32 %v522_v30  ;;  %556 = vadd.xlane.f32.xlu1 %v994_v14 }
 0x1b7   :  { %v487_v12 = vpop.permute.xlu1 %486 }
 0x1b8   :  { %v508_v21 = vsub.f32 %v1331_v17, %v487_v12  ;;  %v699_v17 = vsel %vm683_vm8, %v1261_v61, 0.0  ;;  %v1813_v61 = vsub.f32 %v1441_v37, %v1452_v42  ;;  %v368_v37 = vmul.f32 1.442695, %v1816_v6 }
 0x1b9   :  { %v1817_v42 = vsub.f32 %v1478_v63, %v1484_v10 }
 0x1ba   :  { %v996_v57 = vpop.eup %995  ;;  %v538_v2 = vmul.f32 1.442695, %v508_v21  ;;  %v366_v7 = vmul.f32 1.442695, %v1813_v61  ;;  %v342_v21 = vld [vmem:[#allocation4 + $0x40] sm:$0xff]  ;;  %v347_v61 = vld [vmem:[#allocation4 + $0x68] sm:$0xff] }
 0x1bb   :  { %554 = vadd.xlane.f32.xlu0 %v996_v57  ;;  %v390_v28 = vmul.f32 1.442695, %v1817_v42  ;;  %v335_v57 = vld [vmem:[#allocation4 + $0x8] sm:$0xff] }
 0x1bc   :  { %997 = vpow2.f32 %v538_v2  ;;  %725 = vadd.xlane.f32.xlu1 %v698_v43  ;;  %v346_v43 = vld [vmem:[#allocation4 + $0x60] sm:$0xff] }
 0x1bd   :  { %999 = vpow2.f32 %v516_v13 }
 0x1bf   :  { %v472_v56 = vpop.permute.xlu1 %471 }
 0x1c0   :  { %v505_v23 = vsub.f32 %v1361_v24, %v472_v56  ;;  %v697_v24 = vsel %vm681_vm6, %v1328_v16, 0.0  ;;  %v374_v16 = vmul.f32 1.442695, %v1814_v59 }
 0x1c2   :  { %v998_v4 = vpop.eup %997  ;;  %v532_v47 = vmul.f32 1.442695, %v505_v23 }
 0x1c3   :  { %570 = vadd.xlane.f32.xlu2 %v998_v4  ;;  %v1000_v20 = vpop.eup %999 }
 0x1c4   :  { %731 = vadd.xlane.f32.xlu1 %v701_v53  ;;  %1001 = vpow2.f32 %v532_v47  ;;  %v1820_v53 = vsub.f32 %v1559_v45, %v1564_v1  ;;  %v866_v45 = vld [vmem:[#allocation5] sm:$0xff] }
 0x1c6   :  { %v386_v47 = vmul.f32 1.442695, %v1820_v53  ;;  %v867_v53 = vld [vmem:[#allocation5 + $0x8] sm:$0xff] }
 0x1c7   :  { %v492_v31 = vpop.permute.xlu0 %491 }
 0x1c8   :  { %v509_v32 = vsub.f32 %v1364_v25, %v492_v31  ;;  %v1815_v25 = vsub.f32 %v1476_v62, %v1481_v5  ;;  %v1818_v62 = vsub.f32 %v1497_v15, %v1504_v26 }
 0x1ca   :  { %v540_v55 = vmul.f32 1.442695, %v509_v32  ;;  %v1002_v58 = vpop.eup %1001  ;;  %v382_v9 = vmul.f32 1.442695, %v1815_v25  ;;  %v392_v5 = vmul.f32 1.442695, %v1818_v62 }
 0x1cb   :  { %548 = vadd.xlane.f32.xlu2 %v1000_v20  ;;  %v790_v25 = vld [vmem:[#allocation3 + $0x20] sm:$0xff]  ;;  %v343_v62 = vld [vmem:[#allocation4 + $0x48] sm:$0xff] }
 0x1cc   :  { %1003 = vpow2.f32 %v540_v55 }
 0x1cd   :  { %1005 = vpow2.f32 %v366_v7 }
 0x1ce   :  { %1007 = vpow2.f32 %v374_v16 }
 0x1cf   :  { %1009 = vpow2.f32 %v382_v9  ;;  %v1822_v9 = vsub.f32 %v1525_v33, %v1530_v49 }
 0x1d0   :  { %1011 = vpow2.f32 %v368_v37  ;;  %v1823_v37 = vsub.f32 %v1601_v39, %v1604_v3 }
 0x1d1   :  { %1013 = vpow2.f32 %v390_v28 }
 0x1d2   :  { %v1004_v54 = vpop.eup %1003  ;;  %v380_v42 = vmul.f32 1.442695, %v1823_v37  ;;  %v795_v37 = vld [vmem:[#allocation3 + $0x48] sm:$0xff] }
 0x1d3   :  { %572 = vadd.xlane.f32.xlu0 %v1004_v54  ;;  %564 = vadd.xlane.f32.xlu2 %v1002_v58  ;;  %v1006_v0 = vpop.eup %1005  ;;  %v786_v58 = vld [vmem:[#allocation3] sm:$0xff]  ;;  %v1821_v54 = vsub.f32 %v1527_v40, %v1533_v52 }
 0x1d4   :  { %v398_v11 = vmul.f32 %v1006_v0, %v334_v34  ;;  %v1008_v36 = vpop.eup %1007 }
 0x1d5   :  { %v402_v51 = vmul.f32 %v1008_v36, %v338_v41  ;;  %v1010_v10 = vpop.eup %1009  ;;  %v344_v41 = vld [vmem:[#allocation4 + $0x50] sm:$0xff] }
 0x1d6   :  { %v1012_v12 = vpop.eup %1011  ;;  %v406_v48 = vmul.f32 %v1010_v10, %v342_v21  ;;  %v794_v21 = vld [vmem:[#allocation3 + $0x40] sm:$0xff] }
 0x1d7   :  { %v1014_v2 = vpop.eup %1013  ;;  %v399_v15 = vmul.f32 %v1012_v12, %v335_v57  ;;  %v1824_v57 = vsub.f32 %v1561_v50, %v1567_v8 }
 0x1d8   :  { %v410_v26 = vmul.f32 %v1014_v2, %v346_v43 }
 0x1d9   :  { %v378_v2 = vmul.f32 1.442695, %v1824_v57 }
 0x1db   :  { %727 = vadd.xlane.f32.xlu0 %v699_v17  ;;  %723 = vadd.xlane.f32.xlu2 %v697_v24  ;;  %v384_v17 = vmul.f32 1.442695, %v1821_v54  ;;  %v791_v54 = vld [vmem:[#allocation3 + $0x28] sm:$0xff] }
 0x1e3   :  { %733 = vadd.xlane.f32.xlu0 %v702_v35  ;;  %729 = vadd.xlane.f32.xlu2 %v700_v44  ;;  %v339_v44 = vld [vmem:[#allocation4 + $0x28] sm:$0xff] }
 0x1fe   :  { %v543_v46 = vpop.xlane.xlu2 %542 }
 0x1ff   :  { %v574_v38 = vadd.f32 %v543_v46, %v398_v11 }
 0x201   :  { %591 = vst.msk [vmem:[#allocation4] sm:$0xff] %vm46_vm15, %v574_v38  ;;  %v370_v38 = vmul.f32 1.442695, %v1822_v9 }
 0x206   :  { %v551_v30 = vpop.xlane.xlu1 %550 }
 0x207   :  { %v578_v14 = vadd.f32 %v551_v30, %v402_v51  ;;  %v870_v30 = vld [vmem:[#allocation5 + $0x20] sm:$0xff] }
 0x208   :  { %v802_v63 = vld [vmem:[#allocation4] sm:$0xff] }
 0x209   :  { %1015 = vlog2.f32 %v802_v63  ;;  %595 = vst.msk [vmem:[#allocation4 + $0x20] sm:$0xff] %vm46_vm15, %v578_v14 }
 0x20a   :  { %1017 = vpow2.f32 %v392_v5 }
 0x20b   :  { %1019 = vpow2.f32 %v376_v29 }
 0x20e   :  { %v545_v56 = vpop.xlane.xlu1 %544 }
 0x20f   :  { %v559_v13 = vpop.xlane.xlu2 %558  ;;  %v1016_v4 = vpop.eup %1015  ;;  %v575_v23 = vadd.f32 %v545_v56, %v399_v15  ;;  %v336_v56 = vld [vmem:[#allocation4 + $0x10] sm:$0xff] }
 0x210   :  { %v567_v18 = vpop.xlane.xlu0 %566  ;;  %v582_v27 = vadd.f32 %v559_v13, %v406_v48  ;;  %v819_v31 = vmul.f32 0.6931472, %v1016_v4  ;;  %v806_v32 = vld [vmem:[#allocation4 + $0x20] sm:$0xff]  ;;  %v1018_v55 = vpop.eup %1017  ;;  %v787_v13 = vld [vmem:[#allocation3 + $0x8] sm:$0xff] }
 0x211   :  { %v586_v20 = vadd.f32 %v567_v18, %v410_v26  ;;  %1021 = vlog2.f32 %v806_v32  ;;  %v1020_v24 = vpop.eup %1019  ;;  %592 = vst.msk [vmem:[#allocation4 + $0x8] sm:$0xff] %vm46_vm15, %v575_v23  ;;  %v411_v59 = vmul.f32 %v1018_v55, %v347_v61  ;;  %v874_v26 = vld [vmem:[#allocation5 + $0x40] sm:$0xff]  ;;  %v341_v23 = vld [vmem:[#allocation4 + $0x38] sm:$0xff] }
 0x212   :  { %599 = vst.msk [vmem:[#allocation4 + $0x40] sm:$0xff] %vm46_vm15, %v582_v27  ;;  %v850_v35 = vadd.f32 %v819_v31, %v786_v58  ;;  %1023 = vpow2.f32 %v386_v47  ;;  %v403_v7 = vmul.f32 %v1020_v24, %v339_v44 }
 0x213   :  { %603 = vst.msk [vmem:[#allocation4 + $0x60] sm:$0xff] %vm46_vm15, %v586_v20  ;;  %1025 = vpow2.f32 %v384_v17  ;;  %v1825_v17 = vsub.f32 %v1546_v60, %v1549_v22  ;;  %v618_v22 = vld [vmem:[#allocation5 + $0x58] sm:$0xff] }
 0x214   :  { %v882_v1 = vsub.f32 %v850_v35, %v866_v45 }
 0x215   :  { %v394_v24 = vmul.f32 1.442695, %v1825_v17 }
 0x216   :  { %898 = vst.msk [vmem:[%s1800_s6] sm:$0xff] %vm46_vm15, %v882_v1  ;;  %v569_v52 = vpop.xlane.xlu1 %568  ;;  %v871_v1 = vld [vmem:[#allocation5 + $0x28] sm:$0xff] }
 0x217   :  { %v553_v40 = vpop.xlane.xlu2 %552  ;;  %v1022_v16 = vpop.eup %1021  ;;  %v587_v34 = vadd.f32 %v569_v52, %v411_v59 }
 0x218   :  { %v579_v0 = vadd.f32 %v553_v40, %v403_v7  ;;  %v827_v11 = vmul.f32 0.6931472, %v1022_v16  ;;  %v1024_v6 = vpop.eup %1023  ;;  %v803_v36 = vld [vmem:[#allocation4 + $0x8] sm:$0xff]  ;;  %v340_v7 = vld [vmem:[#allocation4 + $0x30] sm:$0xff] }
 0x219   :  { %v810_v46 = vld [vmem:[#allocation4 + $0x40] sm:$0xff]  ;;  %604 = vst.msk [vmem:[#allocation4 + $0x68] sm:$0xff] %vm46_vm15, %v587_v34  ;;  %v1026_v51 = vpop.eup %1025  ;;  %v408_v33 = vmul.f32 %v1024_v6, %v344_v41  ;;  %v348_v41 = vld [vmem:[#allocation4 + $0x70] sm:$0xff] }
 0x21a   :  { %1027 = vlog2.f32 %v810_v46  ;;  %596 = vst.msk [vmem:[#allocation4 + $0x28] sm:$0xff] %vm46_vm15, %v579_v0  ;;  %v854_v28 = vadd.f32 %v827_v11, %v790_v25  ;;  %v407_v49 = vmul.f32 %v1026_v51, %v343_v62  ;;  %v1826_v34 = vld [vmem:[#allocation9_spill] sm:$0xff]  ;;  %v1827_v11 = vld [vmem:[#allocation11_spill] sm:$0xff]  ;;  %v875_v51 = vld [vmem:[#allocation5 + $0x48] sm:$0xff] }
 0x21b   :  { %1029 = vlog2.f32 %v803_v36  ;;  %v1828_v46 = vsub.f32 %v1826_v34, %v1827_v11 }
 0x21c   :  { %v886_v5 = vsub.f32 %v854_v28, %v870_v30  ;;  %1031 = vpow2.f32 %v370_v38 }
 0x21d   :  { %1033 = vpow2.f32 %v380_v42  ;;  %v372_v25 = vmul.f32 1.442695, %v1828_v46 }
 0x21e   :  { %902 = vst.msk [vmem:[%s1800_s6 + $0x20] sm:$0xff] %vm46_vm15, %v886_v5  ;;  %v563_v39 = vpop.xlane.xlu1 %562  ;;  %v561_v14 = vpop.xlane.xlu0 %560  ;;  %v621_v5 = vld [vmem:[#allocation5 + $0x70] sm:$0xff] }
 0x21f   :  { %v584_v19 = vadd.f32 %v563_v39, %v408_v33  ;;  %v583_v10 = vadd.f32 %v561_v14, %v407_v49  ;;  %v1829_v39 = vld [vmem:[#allocation10_spill] sm:$0xff] }
 0x220   :  { %v1028_v3 = vpop.eup %1027 }
 0x221   :  { %v835_v29 = vmul.f32 0.6931472, %v1028_v3  ;;  %v807_v63 = vld [vmem:[#allocation4 + $0x28] sm:$0xff]  ;;  %v1030_v12 = vpop.eup %1029  ;;  %601 = vst.msk [vmem:[#allocation4 + $0x50] sm:$0xff] %vm46_vm15, %v584_v19  ;;  %v1830_v3 = vld [vmem:[#allocation12_spill] sm:$0xff] }
 0x222   :  { %1035 = vlog2.f32 %v807_v63  ;;  %v821_v48 = vmul.f32 0.6931472, %v1030_v12  ;;  %600 = vst.msk [vmem:[#allocation4 + $0x48] sm:$0xff] %vm46_vm15, %v583_v10  ;;  %v1032_v15 = vpop.eup %1031  ;;  %v1831_v14 = vsub.f32 %v1829_v39, %v1830_v3  ;;  %v1832_v12 = vld [vmem:[#allocation13_spill] sm:$0xff] }
 0x223   :  { %v858_v43 = vadd.f32 %v835_v29, %v794_v21  ;;  %v1034_v4 = vpop.eup %1033  ;;  %1037 = vpow2.f32 %v378_v2  ;;  %v400_v8 = vmul.f32 %v1032_v15, %v336_v56  ;;  %v1833_v21 = vld [vmem:[#allocation14_spill] sm:$0xff] }
 0x224   :  { %v851_v27 = vadd.f32 %v821_v48, %v787_v13  ;;  %v405_v32 = vmul.f32 %v1034_v4, %v341_v23  ;;  %v388_v19 = vmul.f32 1.442695, %v1831_v14  ;;  %v1834_v57 = vsub.f32 %v1832_v12, %v1833_v21  ;;  %v793_v4 = vld [vmem:[#allocation3 + $0x38] sm:$0xff]  ;;  %v868_v23 = vld [vmem:[#allocation5 + $0x10] sm:$0xff] }
 0x225   :  { %v890_v18 = vsub.f32 %v858_v43, %v874_v26  ;;  %v788_v26 = vld [vmem:[#allocation3 + $0x10] sm:$0xff]  ;;  %v789_v14 = vld [vmem:[#allocation3 + $0x18] sm:$0xff] }
 0x226   :  { %v883_v50 = vsub.f32 %v851_v27, %v867_v53  ;;  %v547_v31 = vpop.xlane.xlu0 %546  ;;  %v396_v2 = vmul.f32 1.442695, %v1834_v57  ;;  %v337_v27 = vld [vmem:[#allocation4 + $0x18] sm:$0xff] }
 0x227   :  { %906 = vst.msk [vmem:[%s1800_s6 + $0x40] sm:$0xff] %vm46_vm15, %v890_v18  ;;  %v576_v55 = vadd.f32 %v547_v31, %v400_v8  ;;  %v557_v58 = vpop.xlane.xlu1 %556  ;;  %v622_v57 = vld [vmem:[#allocation5 + $0x78] sm:$0xff] }
 0x228   :  { %v1036_v47 = vpop.eup %1035  ;;  %899 = vst.msk [vmem:[%s1800_s6 + $0x8] sm:$0xff] %vm46_vm15, %v883_v50  ;;  %v581_v44 = vadd.f32 %v557_v58, %v405_v32  ;;  %v873_v50 = vld [vmem:[#allocation5 + $0x38] sm:$0xff]  ;;  %v812_v11 = vld [vmem:[#allocation4 + $0x50] sm:$0xff] }
 0x229   :  { %v829_v20 = vmul.f32 0.6931472, %v1036_v47  ;;  %v811_v35 = vld [vmem:[#allocation4 + $0x48] sm:$0xff]  ;;  %593 = vst.msk [vmem:[#allocation4 + $0x10] sm:$0xff] %vm46_vm15, %v576_v55  ;;  %v1038_v45 = vpop.eup %1037 }
 0x22a   :  { %1039 = vlog2.f32 %v811_v35  ;;  %598 = vst.msk [vmem:[#allocation4 + $0x38] sm:$0xff] %vm46_vm15, %v581_v44  ;;  %v404_v60 = vmul.f32 %v1038_v45, %v340_v7  ;;  %v345_v45 = vld [vmem:[#allocation4 + $0x58] sm:$0xff] }
 0x22b   :  { %v855_v61 = vadd.f32 %v829_v20, %v791_v54  ;;  %1041 = vpow2.f32 %v394_v24  ;;  %v792_v24 = vld [vmem:[#allocation3 + $0x30] sm:$0xff] }
 0x22d   :  { %v887_v59 = vsub.f32 %v855_v61, %v871_v1  ;;  %v349_v61 = vld [vmem:[#allocation4 + $0x78] sm:$0xff]  ;;  %v872_v1 = vld [vmem:[#allocation5 + $0x30] sm:$0xff] }
 0x22e   :  { %v555_v40 = vpop.xlane.xlu0 %554 }
 0x22f   :  { %903 = vst.msk [vmem:[%s1800_s6 + $0x28] sm:$0xff] %vm46_vm15, %v887_v59  ;;  %v580_v16 = vadd.f32 %v555_v40, %v404_v60  ;;  %v726_v0 = vpop.xlane.xlu1 %725 }
 0x230   :  { %v1040_v52 = vpop.eup %1039  ;;  %v804_v38 = vld [vmem:[#allocation4 + $0x10] sm:$0xff]  ;;  %v746_v6 = vadd.f32 %v726_v0, %v618_v22 }
 0x231   :  { %v837_v9 = vmul.f32 0.6931472, %v1040_v52  ;;  %1043 = vlog2.f32 %v804_v38  ;;  %v809_v42 = vld [vmem:[#allocation4 + $0x38] sm:$0xff]  ;;  %597 = vst.msk [vmem:[#allocation4 + $0x30] sm:$0xff] %vm46_vm15, %v580_v16  ;;  %v1042_v28 = vpop.eup %1041  ;;  %v814_v16 = vld [vmem:[#allocation4 + $0x60] sm:$0xff] }
 0x232   :  { %1045 = vlog2.f32 %v809_v42  ;;  %762 = vst.msk [vmem:[#allocation5 + $0x58] sm:$0xff] %vm46_vm15, %v746_v6  ;;  %v412_v62 = vmul.f32 %v1042_v28, %v348_v41  ;;  %v619_v42 = vld [vmem:[#allocation5 + $0x60] sm:$0xff]  ;;  %v617_v28 = vld [vmem:[#allocation5 + $0x50] sm:$0xff] }
 0x233   :  { %v859_v36 = vadd.f32 %v837_v9, %v795_v37  ;;  %1047 = vpow2.f32 %v372_v25  ;;  %v800_v9 = vld [vmem:[#allocation3 + $0x70] sm:$0xff] }
 0x235   :  { %v891_v30 = vsub.f32 %v859_v36, %v875_v51 }
 0x236   :  { %v571_v33 = vpop.xlane.xlu2 %570 }
 0x237   :  { %907 = vst.msk [vmem:[%s1800_s6 + $0x48] sm:$0xff] %vm46_vm15, %v891_v30  ;;  %v1044_v49 = vpop.eup %1043  ;;  %v588_v29 = vadd.f32 %v571_v33, %v412_v62  ;;  %v732_v63 = vpop.xlane.xlu1 %731  ;;  %v815_v33 = vld [vmem:[#allocation4 + $0x68] sm:$0xff] }
 0x238   :  { %v1046_v10 = vpop.eup %1045  ;;  %v823_v43 = vmul.f32 0.6931472, %v1044_v49  ;;  %v808_v48 = vld [vmem:[#allocation4 + $0x30] sm:$0xff]  ;;  %v749_v15 = vadd.f32 %v732_v63, %v621_v5  ;;  %v869_v63 = vld [vmem:[#allocation5 + $0x18] sm:$0xff] }
 0x239   :  { %v833_v13 = vmul.f32 0.6931472, %v1046_v10  ;;  %1049 = vlog2.f32 %v808_v48  ;;  %605 = vst.msk [vmem:[#allocation4 + $0x70] sm:$0xff] %vm46_vm15, %v588_v29  ;;  %v1048_v56 = vpop.eup %1047 }
 0x23a   :  { %v852_v18 = vadd.f32 %v823_v43, %v788_v26  ;;  %765 = vst.msk [vmem:[#allocation5 + $0x70] sm:$0xff] %vm46_vm15, %v749_v15  ;;  %1051 = vpow2.f32 %v388_v19  ;;  %v401_v31 = vmul.f32 %v1048_v56, %v337_v27  ;;  %v798_v43 = vld [vmem:[#allocation3 + $0x60] sm:$0xff] }
 0x23b   :  { %v857_v53 = vadd.f32 %v833_v13, %v793_v4  ;;  %1053 = vpow2.f32 %v396_v2  ;;  %v620_v2 = vld [vmem:[#allocation5 + $0x68] sm:$0xff]  ;;  %v796_v13 = vld [vmem:[#allocation3 + $0x50] sm:$0xff] }
 0x23c   :  { %v884_v8 = vsub.f32 %v852_v18, %v868_v23 }
 0x23d   :  { %v889_v47 = vsub.f32 %v857_v53, %v873_v50 }
 0x23e   :  { %900 = vst.msk [vmem:[%s1800_s6 + $0x10] sm:$0xff] %vm46_vm15, %v884_v8  ;;  %v549_v32 = vpop.xlane.xlu2 %548 }
 0x23f   :  { %v1050_v20 = vpop.eup %1049  ;;  %905 = vst.msk [vmem:[%s1800_s6 + $0x38] sm:$0xff] %vm46_vm15, %v889_v47  ;;  %v577_v55 = vadd.f32 %v549_v32, %v401_v31  ;;  %v797_v32 = vld [vmem:[#allocation3 + $0x58] sm:$0xff] }
 0x240   :  { %v831_v58 = vmul.f32 0.6931472, %v1050_v20  ;;  %v816_v54 = vld [vmem:[#allocation4 + $0x70] sm:$0xff]  ;;  %v1052_v17 = vpop.eup %1051 }
 0x241   :  { %1055 = vlog2.f32 %v816_v54  ;;  %594 = vst.msk [vmem:[#allocation4 + $0x18] sm:$0xff] %vm46_vm15, %v577_v55  ;;  %v1054_v35 = vpop.eup %1053  ;;  %v409_v60 = vmul.f32 %v1052_v17, %v345_v45  ;;  %v880_v6 = vld [vmem:[#allocation5 + $0x70] sm:$0xff]  ;;  %v877_v17 = vld [vmem:[#allocation5 + $0x58] sm:$0xff] }
 0x242   :  { %v856_v44 = vadd.f32 %v831_v58, %v792_v24  ;;  %v413_v59 = vmul.f32 %v1054_v35, %v349_v61  ;;  %v801_v35 = vld [vmem:[#allocation3 + $0x78] sm:$0xff] }
 0x244   :  { %v888_v7 = vsub.f32 %v856_v44, %v872_v1  ;;  %v799_v44 = vld [vmem:[#allocation3 + $0x68] sm:$0xff] }
 0x246   :  { %904 = vst.msk [vmem:[%s1800_s6 + $0x30] sm:$0xff] %vm46_vm15, %v888_v7  ;;  %v573_v22 = vpop.xlane.xlu0 %572  ;;  %v565_v40 = vpop.xlane.xlu2 %564 }
 0x247   :  { %v1056_v52 = vpop.eup %1055  ;;  %v589_v0 = vadd.f32 %v573_v22, %v413_v59  ;;  %v585_v34 = vadd.f32 %v565_v40, %v409_v60 }
 0x248   :  { %v847_v46 = vmul.f32 0.6931472, %v1056_v52  ;;  %v805_v25 = vld [vmem:[#allocation4 + $0x18] sm:$0xff] }
 0x249   :  { %1057 = vlog2.f32 %v805_v25  ;;  %606 = vst.msk [vmem:[#allocation4 + $0x78] sm:$0xff] %vm46_vm15, %v589_v0 }
 0x24a   :  { %1059 = vlog2.f32 %v814_v16  ;;  %v864_v38 = vadd.f32 %v847_v46, %v800_v9  ;;  %602 = vst.msk [vmem:[#allocation4 + $0x58] sm:$0xff] %vm46_vm15, %v585_v34 }
 0x24b   :  { %1061 = vlog2.f32 %v812_v11 }
 0x24c   :  { %v896_v37 = vsub.f32 %v864_v38, %v880_v6 }
 0x24e   :  { %912 = vst.msk [vmem:[%s1800_s6 + $0x70] sm:$0xff] %vm46_vm15, %v896_v37  ;;  %v728_v36 = vpop.xlane.xlu0 %727  ;;  %v724_v41 = vpop.xlane.xlu2 %723 }
 0x24f   :  { %v1058_v51 = vpop.eup %1057  ;;  %v747_v30 = vadd.f32 %v728_v36, %v619_v42  ;;  %v745_v62 = vadd.f32 %v724_v41, %v617_v28 }
 0x250   :  { %v1060_v5 = vpop.eup %1059  ;;  %v825_v49 = vmul.f32 0.6931472, %v1058_v51  ;;  %v817_v39 = vld [vmem:[#allocation4 + $0x78] sm:$0xff] }
 0x251   :  { %v1062_v3 = vpop.eup %1061  ;;  %1063 = vlog2.f32 %v817_v39  ;;  %v813_v19 = vld [vmem:[#allocation4 + $0x58] sm:$0xff]  ;;  %763 = vst.msk [vmem:[#allocation5 + $0x60] sm:$0xff] %vm46_vm15, %v747_v30  ;;  %v843_v10 = vmul.f32 0.6931472, %v1060_v5 }
 0x252   :  { %v853_v29 = vadd.f32 %v825_v49, %v789_v14  ;;  %1065 = vlog2.f32 %v813_v19  ;;  %761 = vst.msk [vmem:[#allocation5 + $0x50] sm:$0xff] %vm46_vm15, %v745_v62  ;;  %v839_v12 = vmul.f32 0.6931472, %v1062_v3 }
 0x253   :  { %1067 = vlog2.f32 %v815_v33  ;;  %v862_v56 = vadd.f32 %v843_v10, %v798_v43 }
 0x254   :  { %v885_v21 = vsub.f32 %v853_v29, %v869_v63  ;;  %v860_v53 = vadd.f32 %v839_v12, %v796_v13 }
 0x256   :  { %901 = vst.msk [vmem:[%s1800_s6 + $0x18] sm:$0xff] %vm46_vm15, %v885_v21  ;;  %v734_v48 = vpop.xlane.xlu0 %733  ;;  %v730_v15 = vpop.xlane.xlu2 %729 }
 0x257   :  { %v1064_v26 = vpop.eup %1063  ;;  %v750_v4 = vadd.f32 %v734_v48, %v622_v57  ;;  %v748_v18 = vadd.f32 %v730_v15, %v620_v2 }
 0x258   :  { %v1066_v27 = vpop.eup %1065  ;;  %v878_v23 = vld [vmem:[#allocation5 + $0x60] sm:$0xff]  ;;  %v849_v55 = vmul.f32 0.6931472, %v1064_v26 }
 0x259   :  { %v1068_v50 = vpop.eup %1067  ;;  %v841_v8 = vmul.f32 0.6931472, %v1066_v27  ;;  %v894_v47 = vsub.f32 %v862_v56, %v878_v23  ;;  %v876_v31 = vld [vmem:[#allocation5 + $0x50] sm:$0xff]  ;;  %766 = vst.msk [vmem:[#allocation5 + $0x78] sm:$0xff] %vm46_vm15, %v750_v4 }
 0x25a   :  { %v892_v20 = vsub.f32 %v860_v53, %v876_v31  ;;  %764 = vst.msk [vmem:[#allocation5 + $0x68] sm:$0xff] %vm46_vm15, %v748_v18  ;;  %v845_v54 = vmul.f32 0.6931472, %v1068_v50  ;;  %v865_v61 = vadd.f32 %v849_v55, %v801_v35 }
 0x25b   :  { %v861_v58 = vadd.f32 %v841_v8, %v797_v32  ;;  %910 = vst.msk [vmem:[%s1800_s6 + $0x60] sm:$0xff] %vm46_vm15, %v894_v47 }
 0x25c   :  { %908 = vst.msk [vmem:[%s1800_s6 + $0x50] sm:$0xff] %vm46_vm15, %v892_v20  ;;  %v863_v1 = vadd.f32 %v845_v54, %v799_v44 }
 0x25d   :  { %v893_v24 = vsub.f32 %v861_v58, %v877_v17 }
 0x25f   :  { %909 = vst.msk [vmem:[%s1800_s6 + $0x58] sm:$0xff] %vm46_vm15, %v893_v24 }
 0x260   :  { %v881_v45 = vld [vmem:[#allocation5 + $0x78] sm:$0xff] }
 0x261   :  { %v897_v7 = vsub.f32 %v865_v61, %v881_v45  ;;  %v879_v59 = vld [vmem:[#allocation5 + $0x68] sm:$0xff] }
 0x262   :  { %v895_v60 = vsub.f32 %v863_v1, %v879_v59 }
 0x263   :  { %913 = vst.msk [vmem:[%s1800_s6 + $0x78] sm:$0xff] %vm46_vm15, %v897_v7 }
 0x264   :  { %911 = vst.msk [vmem:[%s1800_s6 + $0x68] sm:$0xff] %vm46_vm15, %v895_v60 }

</bundles_post_ra>
